<compile_context>
chip_gen: v6e
topology: v6e:2x2x1
jax: 0.10.0
libtpu: 0.0.40
codegen_flags: <defaults>
</compile_context>

<pallas_src>
import functools

import numpy as np
import jax
import jax.numpy as jnp
from jax.experimental import pallas as pl
from jax.experimental.pallas import tpu as pltpu


# ----------------------------------------------------------------------------
# Hardware-aware constants & tiling helpers.
# ----------------------------------------------------------------------------
def _round_up(x, m):
    return (x + m - 1) // m * m


def _vmem_capacity_bytes():
    try:
        return int(pltpu.get_tpu_info().vmem_capacity_bytes)
    except Exception:
        return 64 * 1024 * 1024            # conservative (v7x-sized) fallback


_VMEM_CAP = _vmem_capacity_bytes()
_VMEM_LIMIT = int(min(_VMEM_CAP * 3 // 4, 100 * 1024 * 1024))  # headroom for internal scratch
_K_MAX = 2304 if _VMEM_CAP >= 96 * 1024 * 1024 else 1024       # larger K tiles on 128MiB parts
_TM_MAX = 512
_TN_MAX = 2048
_DIRECT_BUDGET = _VMEM_LIMIT // 2          # VMEM budget for the whole-image direct-conv path


def _choose_k_tiling(k):
    """(nk, tk, kp): tk multiple of 128 (prefer 256), minimal padding kp - k."""
    if k <= _K_MAX:
        return 1, k, k
    nk0 = -(-k // _K_MAX)
    best = None
    for nk in range(nk0, nk0 + 8):
        tk = _round_up(-(-k // nk), 128)
        kp = tk * nk
        key = (kp, 0 if tk % 256 == 0 else 1)
        if best is None or key < best[0]:
            best = (key, nk, tk, kp)
    return best[1], best[2], best[3]


def _choose_n_tiling(ng):
    """(ngp, tn, grid_n): lane-dense output width (multiple of 128), N tile, N grid."""
    ngp = _round_up(ng, 128)
    if ngp <= _TN_MAX:
        return ngp, ngp, 1
    grid_n = -(-ngp // _TN_MAX)
    tn = _round_up(-(-ngp // grid_n), 128)
    return tn * grid_n, tn, grid_n


def _block_spec(shape, index_map, buffer_count=None):
    """BlockSpec with optional deeper pipelining (guarded for older jax)."""
    if buffer_count is not None and hasattr(pl, "Buffered"):
        try:
            return pl.BlockSpec(shape, index_map,
                                pipeline_mode=pl.Buffered(buffer_count))
        except TypeError:
            pass
    return pl.BlockSpec(shape, index_map)


def _direct_fits(hp, wp, c, taps, ho, wo, ngp, res_ch):
    """Conservative VMEM estimate for the whole-image direct-conv path."""
    need = (2 * hp * wp * c * 2            # input tile, double-buffered
            + 2 * taps * taps * c * ngp * 2
            + 2 * ho * wo * ngp * 2        # output tile, double-buffered
            + ho * wo * ngp * 4            # f32 accumulator
            + 4 * ho * wo * c * 2)         # shifted-patch temporaries
    if res_ch:
        need += 2 * ho * wo * res_ch * 2 + ho * wo * ngp * 4
    return need <= _DIRECT_BUDGET


def _apply_act(acc, act, slope):
    if act in ("prelu", "lrelu"):
        return jnp.where(acc >= 0.0, acc, jnp.float32(slope) * acc)
    if act == "tanh":
        return jnp.tanh(acc)
    return acc


def _add_residual(acc, r):
    """Residual widened (with zero lanes) to the padded output width, then added."""
    r = r.astype(jnp.float32)
    pad = acc.shape[-1] - r.shape[-1]
    if pad:
        r = jnp.concatenate([r, jnp.zeros((r.shape[0], pad), jnp.float32)], axis=-1)
    return acc + r


# ----------------------------------------------------------------------------
# Pallas kernel 1: K/N-tiled GEMM (bf16 MXU, f32 VMEM accumulator) with fused
# bias + activation + optional residual add.
# ----------------------------------------------------------------------------
def _gemm_kernel(*refs, act, slope, nk, has_res):
    if has_res:
        a_ref, w_ref, b_ref, r_ref, o_ref, acc_ref = refs
    else:
        a_ref, w_ref, b_ref, o_ref, acc_ref = refs
        r_ref = None
    kk = pl.program_id(2)

    @pl.when(kk == 0)
    def _init():
        acc_ref[...] = jnp.zeros_like(acc_ref)

    acc_ref[...] += jnp.dot(a_ref[...], w_ref[...],
                            preferred_element_type=jnp.float32)

    @pl.when(kk == nk - 1)
    def _finish():
        acc = acc_ref[...] + b_ref[...]             # (1, tn) broadcasts over rows
        acc = _apply_act(acc, act, slope)
        if has_res:
            acc = _add_residual(acc, r_ref[...])
        o_ref[...] = acc.astype(o_ref.dtype)


class FusedGemm:
    """Pre-packed (Kp, Ngp) bf16 weight + f32 bias; K-tiled / N-tiled fused GEMM."""

    def __init__(self, w, b, ng, act, slope, out_dtype, tn, grid_n):
        w = np.asarray(w, np.float32)
        b = np.asarray(b, np.float32)
        k, ngp = w.shape
        nk, tk, kp = _choose_k_tiling(k)
        if kp > k:
            w = np.concatenate([w, np.zeros((kp - k, ngp), np.float32)], axis=0)
        self.K, self.Kp, self.TK, self.nk = k, kp, tk, nk
        self.Ng, self.Ngp, self.TN, self.grid_n = ng, ngp, tn, grid_n
        self.w = jnp.asarray(w, jnp.bfloat16)
        self.b = jnp.asarray(b.reshape(1, ngp), jnp.float32)
        self.act, self.slope, self.out_dtype = act, float(slope), out_dtype

    def __call__(self, a, residual=None):
        m = a.shape[0]
        a = a.astype(jnp.bfloat16)
        if self.Kp > self.K:
            # Rare (only K > _K_MAX and no exact tiling); weights already row-padded.
            a = jnp.pad(a, ((0, 0), (0, self.Kp - self.K)))
        tm = min(_TM_MAX, m)
        grid_m = -(-m // tm)
        if grid_m == 1 and m >= 256:
            # >=2 parallel M steps so both v7x TensorCores get work.
            tm = _round_up(-(-m // 2), 8)
            grid_m = -(-m // tm)
        tn, grid_n, ngp = self.TN, self.grid_n, self.Ngp
        tk, nk = self.TK, self.nk
        has_res = residual is not None
        if has_res:
            residual = residual.astype(jnp.bfloat16)
            if grid_n > 1 and residual.shape[1] < ngp:
                residual = jnp.pad(residual, ((0, 0), (0, ngp - residual.shape[1])))
        kernel = functools.partial(_gemm_kernel, act=self.act, slope=self.slope,
                                   nk=nk, has_res=has_res)
        a_bufs = 3 if (nk == 1 and self.K <= 128) else None   # tiny-K 1x1 layers: hide A DMA
        in_specs = [
            _block_spec((tm, tk), lambda i, j, kb: (i, kb), a_bufs),
            pl.BlockSpec((tk, tn), lambda i, j, kb: (kb, j)),
            pl.BlockSpec((1, tn), lambda i, j, kb: (0, j)),
        ]
        args = [a, self.w, self.b]
        if has_res:
            rwidth = residual.shape[1] if grid_n == 1 else tn
            in_specs.append(pl.BlockSpec((tm, rwidth), lambda i, j, kb: (i, j)))
            args.append(residual)
        flops = 2 * m * self.K * self.Ng
        trans = m * self.Ng if self.act == "tanh" else 0
        bytes_acc = 2 * (m * self.Kp + self.Kp * ngp + m * ngp) + 4 * ngp
        if has_res:
            bytes_acc += 2 * m * residual.shape[1]
        out = pl.pallas_call(
            kernel,
            out_shape=jax.ShapeDtypeStruct((m, ngp), self.out_dtype),
            grid=(grid_m, grid_n, nk),
            in_specs=in_specs,
            out_specs=pl.BlockSpec((tm, tn), lambda i, j, kb: (i, j)),
            scratch_shapes=[pltpu.VMEM((tm, tn), jnp.float32)],
            compiler_params=pltpu.CompilerParams(
                dimension_semantics=("parallel", "parallel", "arbitrary"),
                vmem_limit_bytes=_VMEM_LIMIT),
            cost_estimate=pl.CostEstimate(flops=int(flops), transcendentals=int(trans),
                                          bytes_accessed=int(bytes_acc)),
        )(*args)
        return out[:, :self.Ng] if ngp > self.Ng else out


# ----------------------------------------------------------------------------
# Pallas kernel 2: direct stride-1 conv (no im2col) — whole padded image in VMEM,
# k*k shifted MXU matmuls, fused bias + activation + optional residual add.
# ----------------------------------------------------------------------------
def _conv_direct_kernel(*refs, taps, ho, wo, act, slope, has_res):
    if has_res:
        x_ref, w_ref, b_ref, r_ref, o_ref = refs
    else:
        x_ref, w_ref, b_ref, o_ref = refs
        r_ref = None
    c = x_ref.shape[-1]
    ngp = o_ref.shape[-1]
    xv = x_ref[...]                                        # (1, Hp, Wp, C) bf16
    acc = jnp.zeros((ho * wo, ngp), jnp.float32)
    for dy in range(taps):
        for dx in range(taps):
            patch = xv[0, dy:dy + ho, dx:dx + wo, :].reshape(ho * wo, c)
            acc = acc + jnp.dot(patch, w_ref[dy * taps + dx],
                                preferred_element_type=jnp.float32)
    acc = acc + b_ref[...]
    acc = _apply_act(acc, act, slope)
    if has_res:
        r = r_ref[...].reshape(ho * wo, r_ref.shape[-1])
        acc = _add_residual(acc, r)
    o_ref[...] = acc.reshape(1, ho, wo, ngp).astype(o_ref.dtype)


def _conv_direct(xp, w_taps, bias, res, *, taps, ho, wo, ng, act, slope, out_dtype):
    n, hp, wp, c = xp.shape
    ngp = w_taps.shape[-1]
    has_res = res is not None
    kernel = functools.partial(_conv_direct_kernel, taps=taps, ho=ho, wo=wo,
                               act=act, slope=slope, has_res=has_res)
    in_specs = [
        pl.BlockSpec((1, hp, wp, c), lambda b: (b, 0, 0, 0)),
        pl.BlockSpec((taps * taps, c, ngp), lambda b: (0, 0, 0)),
        pl.BlockSpec((1, ngp), lambda b: (0, 0)),
    ]
    args = [xp, w_taps, bias]
    if has_res:
        in_specs.append(pl.BlockSpec((1, ho, wo, res.shape[-1]),
                                     lambda b: (b, 0, 0, 0)))
        args.append(res.astype(jnp.bfloat16))
    flops = 2 * n * ho * wo * taps * taps * c * ng
    trans = n * ho * wo * ng if act == "tanh" else 0
    bytes_acc = 2 * (n * hp * wp * c + taps * taps * c * ngp + n * ho * wo * ngp)
    if has_res:
        bytes_acc += 2 * n * ho * wo * res.shape[-1]
    out = pl.pallas_call(
        kernel,
        out_shape=jax.ShapeDtypeStruct((n, ho, wo, ngp), out_dtype),
        grid=(n,),
        in_specs=in_specs,
        out_specs=pl.BlockSpec((1, ho, wo, ngp), lambda b: (b, 0, 0, 0)),
        compiler_params=pltpu.CompilerParams(
            dimension_semantics=("parallel",),
            vmem_limit_bytes=_VMEM_LIMIT),
        cost_estimate=pl.CostEstimate(flops=int(flops), transcendentals=int(trans),
                                      bytes_accessed=int(bytes_acc)),
    )(*args)
    return out[..., :ng] if ngp > ng else out


# ----------------------------------------------------------------------------
# Layout helpers (plain JAX glue).
# ----------------------------------------------------------------------------
def _extract_patches(x, k, out_h, out_w):
    """Stride-1 VALID im2col; channel ordering (dy, dx, c).  (GEMM fallback only.)"""
    n, _, _, c = x.shape
    if k == 1:
        return x[:, :out_h, :out_w, :].reshape(n * out_h * out_w, c)
    cols = [x[:, dy:dy + out_h, dx:dx + out_w, :]
            for dy in range(k) for dx in range(k)]
    return jnp.concatenate(cols, axis=-1).reshape(n * out_h * out_w, k * k * c)


def _space_to_depth(x, s):
    n, h, w, c = x.shape
    x = x.reshape(n, h // s, s, w // s, s, c).transpose(0, 1, 3, 2, 4, 5)
    return x.reshape(n, h // s, w // s, s * s * c)


def _depth_to_space(x, s):
    n, h, w, c = x.shape
    c0 = c // (s * s)
    x = x.reshape(n, h, w, s, s, c0).transpose(0, 1, 3, 2, 4, 5)
    return x.reshape(n, h * s, w * s, c0)


def max_pool2(x):
    n, h, w, c = x.shape
    return x.reshape(n, h // 2, 2, w // 2, 2, c).max(axis=(2, 4))


def upsample2_bilinear(x):
    # TODO(synk): Flownet's 2x upsample assumed bilinear (FRVSR FNet); jax.image glue.
    n, h, w, c = x.shape
    y = jax.image.resize(x.astype(jnp.float32), (n, 2 * h, 2 * w, c), method="bilinear")
    return y.astype(x.dtype)


def stn_warp(img, u, v):
    """STN(padding_mode='border'): bilinear sample of img at (x + u, y + v)."""
    # TODO(synk): F.grid_sample is a data-dependent gather; kept in plain JAX.
    n, h, w, c = img.shape
    gy = jnp.arange(h, dtype=jnp.float32).reshape(1, h, 1)
    gx = jnp.arange(w, dtype=jnp.float32).reshape(1, 1, w)
    x = jnp.clip(gx + u, 0.0, w - 1.0)
    y = jnp.clip(gy + v, 0.0, h - 1.0)
    x0 = jnp.floor(x)
    y0 = jnp.floor(y)
    wx = (x - x0)[..., None]
    wy = (y - y0)[..., None]
    x0i = x0.astype(jnp.int32)
    y0i = y0.astype(jnp.int32)
    x1i = jnp.minimum(x0i + 1, w - 1)
    y1i = jnp.minimum(y0i + 1, h - 1)
    flat = img.reshape(n, h * w, c)

    def gat(yy, xx):
        idx = (yy * w + xx).reshape(n, h * w, 1)
        return jnp.take_along_axis(flat, idx, axis=1).reshape(n, h, w, c)

    v00, v01 = gat(y0i, x0i), gat(y0i, x1i)
    v10, v11 = gat(y1i, x0i), gat(y1i, x1i)
    top = v00 * (1.0 - wx) + v01 * wx
    bot = v10 * (1.0 - wx) + v11 * wx
    return top * (1.0 - wy) + bot * wy


# ----------------------------------------------------------------------------
# Deterministic parameter generator.
# ----------------------------------------------------------------------------
class _ParamGen:
    def __init__(self, seed):
        self._key = jax.random.PRNGKey(seed)
        self._n = 0

    def normal(self, shape, scale):
        self._n += 1
        k = jax.random.fold_in(self._key, self._n)
        return scale * jax.random.normal(k, shape, jnp.float32)


def get_kernel_stride(scale):
    return {2: (6, 2), 4: (8, 4), 8: (12, 8)}[scale]


# ----------------------------------------------------------------------------
# Conv layer: PyTorch Conv2d / ConvTranspose2d semantics, lowered to a stride-1
# conv and dispatched to the direct kernel or the fused GEMM.
# ----------------------------------------------------------------------------
class EasyConv2d:
    """Conv2d/ConvTranspose2d with 'same' padding + optional activation.
    PReLU uses its single PyTorch-default parameter 0.25 (baked as a constant)."""

    def __init__(self, gen, cin, cout, k, stride=1, activation=None,
                 transposed=False, out_dtype=jnp.bfloat16):
        self.cin, self.cout, self.k, self.s = cin, cout, k, stride
        self.transposed = transposed
        act, slope = {"prelu": ("prelu", 0.25),
                      "lrelu": ("lrelu", 0.2),
                      "tanh": ("tanh", 0.0)}.get(activation, ("linear", 0.0))
        self.act, self.slope, self.out_dtype = act, float(slope), out_dtype
        scale = 1.0 / float(cin * k * k) ** 0.5
        if transposed:
            w = np.asarray(gen.normal((cin, cout, k, k), scale), np.float32)
        else:
            w = np.asarray(gen.normal((cout, cin, k, k), scale), np.float32)
        b = np.asarray(gen.normal((cout,), scale), np.float32)

        if transposed:
            # Sub-pixel decomposition of ConvTranspose2d (stride s, pad p, out_pad op):
            # stride-1 conv with E taps producing s^2*Cout channels + depth-to-space.
            op = k % 2
            p = (k + op - stride) // 2
            assert (k - stride - 2 * p + op) == 0, "sub-pixel lowering expects out = stride*in"
            e_min = -((stride - 1 + p) // stride)
            e_max = (k - 1 - p) // stride
            E = e_max - e_min + 1
            self.mode = "deconv"
            self.taps, self.pad_lo, self.pad_hi = E, e_max, -e_min
            self.ce = cin
            w2 = np.zeros((E, E, cin, stride, stride, cout), np.float32)
            for gh in range(E):
                for rh in range(stride):
                    kh = (e_max - gh) * stride + rh + p
                    if not 0 <= kh < k:
                        continue
                    for gw in range(E):
                        for rw in range(stride):
                            kw = (e_max - gw) * stride + rw + p
                            if 0 <= kw < k:
                                w2[gh, gw, :, rh, rw, :] = w[:, :, kh, kw]
            w_mat = w2.reshape(E * E * cin, stride * stride * cout)
            b_mat = np.tile(b, stride * stride)
            self.ng = stride * stride * cout
        elif stride > 1:
            # Strided conv -> space-to-depth input, stride-1 conv with ke=ceil(k/s) taps.
            p = (k - 1) // 2
            ke = -(-k // stride)
            k2 = ke * stride
            self.mode = "conv_s2d"
            self.p, self.k2 = p, k2
            self.taps = ke
            self.ce = stride * stride * cin
            wp_ = np.zeros((cout, cin, k2, k2), np.float32)
            wp_[:, :, :k, :k] = w
            wp_ = wp_.reshape(cout, cin, ke, stride, ke, stride)
            w_mat = wp_.transpose(2, 4, 3, 5, 1, 0).reshape(
                ke * ke * stride * stride * cin, cout)
            b_mat = b
            self.ng = cout
        else:
            self.mode = "conv"
            self.p = (k - 1) // 2
            self.taps = k
            self.ce = cin
            w_mat = w.transpose(2, 3, 1, 0).reshape(k * k * cin, cout)
            b_mat = b
            self.ng = cout

        # Lane-dense output: pad Cout columns to a multiple of 128 (sliced off after).
        ng = self.ng
        ngp, tn, grid_n = _choose_n_tiling(ng)
        if ngp > ng:
            w_mat = np.concatenate(
                [w_mat, np.zeros((w_mat.shape[0], ngp - ng), np.float32)], axis=1)
            b_mat = np.concatenate([b_mat, np.zeros(ngp - ng, np.float32)])
        self.ngp = ngp
        self.w_taps = jnp.asarray(
            w_mat.reshape(self.taps * self.taps, self.ce, ngp), jnp.bfloat16)
        self.bias = jnp.asarray(b_mat.reshape(1, ngp), jnp.float32)
        self.gemm = FusedGemm(w_mat, b_mat, ng, act, slope, out_dtype, tn, grid_n)

    def __call__(self, x, residual=None, force_gemm=False):
        n, h, w, c = x.shape
        if self.mode == "conv":
            k, p = self.taps, self.p
            ho, wo = h + 2 * p - k + 1, w + 2 * p - k + 1
            xp = jnp.pad(x, ((0, 0), (p, p), (p, p), (0, 0))) if p else x
            res = residual
        elif self.mode == "conv_s2d":
            s, ke, k2, p = self.s, self.taps, self.k2, self.p
            assert h % s == 0 and w % s == 0
            ho, wo = h // s, w // s
            rh, rw = h + k2 - s, w + k2 - s
            xp = jnp.pad(x, ((0, 0), (p, rh - h - p), (p, rw - w - p), (0, 0)))
            xp = xp.reshape(n, rh // s, s, rw // s, s, c)
            xp = xp.transpose(0, 1, 3, 2, 4, 5).reshape(n, rh // s, rw // s, s * s * c)
            res = residual
        else:  # deconv (sub-pixel)
            ho, wo = h, w
            xp = jnp.pad(x, ((0, 0), (self.pad_lo, self.pad_hi),
                             (self.pad_lo, self.pad_hi), (0, 0)))
            res = None if residual is None else _space_to_depth(residual, self.s)

        y = self._stride1_conv(xp, ho, wo, res, force_gemm)
        if self.mode == "deconv":
            # TODO(synk): fold depth_to_space / space_to_depth into the kernel index maps.
            y = _depth_to_space(y, self.s)
        return y

    def _stride1_conv(self, xp, ho, wo, res, force_gemm):
        n, hp, wp, ce = xp.shape
        taps = self.taps
        res_ch = 0 if res is None else res.shape[-1]
        use_direct = (not force_gemm and taps > 1 and wo % 8 == 0
                      and _direct_fits(hp, wp, ce, taps, ho, wo, self.ngp, res_ch))
        if use_direct:
            return _conv_direct(xp.astype(jnp.bfloat16), self.w_taps, self.bias, res,
                                taps=taps, ho=ho, wo=wo, ng=self.ng,
                                act=self.act, slope=self.slope,
                                out_dtype=self.out_dtype)
        a = _extract_patches(xp, taps, ho, wo)
        r = None if res is None else res.reshape(n * ho * wo, res_ch)
        out = self.gemm(a, r)
        return out.reshape(n, ho, wo, self.ng)


# ----------------------------------------------------------------------------
# Modules (forward = JAX glue + fused Pallas convs; skip-adds fused in epilogues).
# ----------------------------------------------------------------------------
class RB:
    """Residual block: conv3x3 -> PReLU -> conv3x3 (+identity fused in epilogue)."""

    def __init__(self, gen, ch, kernel_size=3, activation="prelu"):
        self.c1 = EasyConv2d(gen, ch, ch, kernel_size, activation=activation)
        self.c2 = EasyConv2d(gen, ch, ch, kernel_size)

    def __call__(self, x):
        return self.c2(self.c1(x), residual=x)


class UpBlock:
    def __init__(self, gen, nf, k, s):
        self.c1 = EasyConv2d(gen, nf, nf, k, s, activation="prelu", transposed=True)
        self.c2 = EasyConv2d(gen, nf, nf, k, s, activation="prelu")
        self.c3 = EasyConv2d(gen, nf, nf, k, s, activation="prelu", transposed=True)

    def __call__(self, x):
        h0 = self.c1(x)
        l0 = self.c2(h0)
        return self.c3(l0 - x, residual=h0)          # h1 + h0 fused


class DownBlock:
    def __init__(self, gen, nf, k, s):
        self.c1 = EasyConv2d(gen, nf, nf, k, s, activation="prelu")
        self.c2 = EasyConv2d(gen, nf, nf, k, s, activation="prelu", transposed=True)
        self.c3 = EasyConv2d(gen, nf, nf, k, s, activation="prelu")

    def __call__(self, x):
        l0 = self.c1(x)
        h0 = self.c2(l0)
        return self.c3(h0 - x, residual=l0)          # l1 + l0 fused


class DbpnS:
    def __init__(self, gen, scale, base_filter, feat, num_stages):
        k, s = get_kernel_stride(scale)
        self.feat1 = EasyConv2d(gen, base_filter, feat, 1, activation="prelu")
        self.ups, self.downs = [], []
        for i in range(num_stages):
            self.ups.append(UpBlock(gen, feat, k, s))
            if i < num_stages - 1:
                self.downs.append(DownBlock(gen, feat, k, s))
        self.num_stages = num_stages
        self.output_conv = EasyConv2d(gen, feat * num_stages, feat, 1)

    def __call__(self, x):
        x = self.feat1(x)
        h1 = [self.ups[0](x)]
        # NOTE: the listed reference loops `range(num_stages)`, which references
        # down{N-1}/up{N} that __init__ never creates and would mismatch
        # output_conv's feat*num_stages input; the consistent (upstream)
        # behaviour is num_stages-1 back-projection steps, used here.
        for i in range(self.num_stages - 1):
            d = self.downs[i](h1[-1])
            h1.append(self.ups[i + 1](d))
        return self.output_conv(jnp.concatenate(h1, axis=-1))


class Rbpn:
    def __init__(self, gen, channel, scale, base_filter, feat, n_resblock, nFrames):
        self.nFrames = nFrames
        k, s = get_kernel_stride(scale)
        self.feat0 = EasyConv2d(gen, channel, base_filter, 3, activation="prelu")
        self.feat1 = EasyConv2d(gen, 8, base_filter, 3, activation="prelu")
        self.dbpn = DbpnS(gen, scale, base_filter, feat, 3)
        self.res_feat1 = [RB(gen, base_filter, 3, "prelu") for _ in range(n_resblock)]
        self.res_feat1.append(EasyConv2d(gen, base_filter, feat, k, s,
                                         activation="prelu", transposed=True))
        self.res_feat2 = [RB(gen, feat, 3, "prelu") for _ in range(n_resblock)]
        self.res_feat2.append(EasyConv2d(gen, feat, feat, 3, activation="prelu"))
        self.res_feat3 = [RB(gen, feat, 3, "prelu") for _ in range(n_resblock)]
        self.res_feat3.append(EasyConv2d(gen, feat, base_filter, k, s, activation="prelu"))
        self.output = EasyConv2d(gen, (nFrames - 1) * feat, channel, 3)

    @staticmethod
    def _seq(layers, x):
        for layer in layers:
            x = layer(x)
        return x

    @staticmethod
    def _seq_residual(layers, x, residual):
        for layer in layers[:-1]:
            x = layer(x)
        return layers[-1](x, residual=residual)

    def __call__(self, x, neighbors, flows):
        nf = len(neighbors)
        n = x.shape[0]
        feat_input = self.feat0(x)
        # Batch the identical per-frame front end (feat1 + res_feat1) across frames.
        x_all = jnp.concatenate([x] * nf, axis=0)
        nb_all = jnp.concatenate(neighbors, axis=0)
        fl_all = jnp.concatenate([f.astype(x.dtype) for f in flows], axis=0)
        feat_all = self.feat1(jnp.concatenate([x_all, nb_all, fl_all], axis=-1))
        h1_all = self._seq(self.res_feat1, feat_all)
        ht = []
        for j in range(nf):
            h0 = self.dbpn(feat_input)
            h1 = h1_all[j * n:(j + 1) * n]
            # h = h0 + res_feat2(h0 - h1); the +h0 is fused into the last conv epilogue.
            h = self._seq_residual(self.res_feat2, h0 - h1, residual=h0)
            ht.append(h)
            feat_input = self._seq(self.res_feat3, h)
        return self.output(jnp.concatenate(ht, axis=-1))


class Flownet:
    """FRVSR-style FNet coarse flow estimator: three [conv-lrelu-conv-lrelu-maxpool]
    encoder blocks, three [conv-lrelu-conv-lrelu-upsample] decoder blocks, conv-lrelu,
    conv-tanh, scaled by `gain` (pixels).  Flow head emitted in float32."""

    def __init__(self, gen, channel):
        c = 2 * channel
        mk = lambda ci, co, act="lrelu": EasyConv2d(gen, ci, co, 3, activation=act)
        self.down = [(mk(c, 32), mk(32, 32)),
                     (mk(32, 64), mk(64, 64)),
                     (mk(64, 128), mk(128, 128))]
        self.up = [(mk(128, 256), mk(256, 256)),
                   (mk(256, 128), mk(128, 128)),
                   (mk(128, 64), mk(64, 64))]
        self.last1 = mk(64, 32)
        self.last2 = EasyConv2d(gen, 32, 2, 3, activation="tanh",
                                out_dtype=jnp.float32)

    def __call__(self, target, ref, gain=32.0):
        x = jnp.concatenate([target, ref], axis=-1)
        for c1, c2 in self.down:
            x = max_pool2(c2(c1(x)))
        for c1, c2 in self.up:
            x = upsample2_bilinear(c2(c1(x)))
        x = self.last2(self.last1(x))
        return x * jnp.float32(gain)


class Composer:
    def __init__(self, seed, num_channels, scale, base_filter, feat, n_resblock, nFrames):
        gen = _ParamGen(seed)
        self.module = Rbpn(gen, num_channels, scale, base_filter, feat, n_resblock, nFrames)
        self.fnet = Flownet(gen, num_channels)
        self._forward = jax.jit(self._forward_impl)

    def _forward_impl(self, target, neighbors):
        t = jnp.transpose(target, (0, 2, 3, 1)).astype(jnp.bfloat16)
        nbs = [jnp.transpose(nb, (0, 2, 3, 1)).astype(jnp.bfloat16) for nb in neighbors]
        nf = len(nbs)
        n = t.shape[0]
        # Batch all neighbor frames through Flownet (and the warp) in one shot.
        nb_all = jnp.concatenate(nbs, axis=0)
        t_all = jnp.concatenate([t] * nf, axis=0)
        flow_all = self.fnet(t_all, nb_all, gain=32.0)            # (nf*N, H, W, 2) f32
        warp_all = stn_warp(nb_all.astype(jnp.float32),
                            flow_all[..., 0], flow_all[..., 1])   # border-padded bilinear
        flows = [flow_all[i * n:(i + 1) * n] for i in range(nf)]
        warps = [warp_all[i * n:(i + 1) * n] for i in range(nf)]
        sr = self.module(t, nbs, flows)
        to_nchw = lambda a: jnp.transpose(a.astype(jnp.float32), (0, 3, 1, 2))
        return to_nchw(sr), [to_nchw(f) for f in flows], [to_nchw(w) for w in warps]

    def __call__(self, target, neighbors):
        """target: (N,C,H,W); neighbors: list of (N,C,H,W)  (PyTorch NCHW API)."""
        return self._forward(target, list(neighbors))


# ----------------------------------------------------------------------------
if __name__ == "__main__":
    # Self-check: the direct conv kernel and the im2col GEMM kernel must agree.
    chk_conv = EasyConv2d(_ParamGen(123), 8, 8, 3, activation="prelu")
    xchk = jax.random.normal(jax.random.PRNGKey(7), (2, 16, 16, 8), jnp.float32)
    y_direct = chk_conv(xchk)
    y_gemm = chk_conv(xchk, force_gemm=True)
    np.testing.assert_allclose(np.asarray(y_direct.astype(jnp.float32)),
                               np.asarray(y_gemm.astype(jnp.float32)),
                               atol=5e-2, rtol=5e-2)

    N, C, H, W = 2, 3, 16, 16           # channel must be 3 (feat1 expects 3+3+2=8)
    scale, base_filter, feat = 2, 8, 8
    n_resblock, nFrames = 1, 3          # nFrames-1 = 2 neighbor frames

    key = jax.random.PRNGKey(0)
    k_t, k_n = jax.random.split(key)
    target = jax.random.normal(k_t, (N, C, H, W), jnp.float32)
    neighbors = [jax.random.normal(jax.random.fold_in(k_n, i), (N, C, H, W), jnp.float32)
                 for i in range(nFrames - 1)]

    composer = Composer(seed=0, num_channels=C, scale=scale, base_filter=base_filter,
                        feat=feat, n_resblock=n_resblock, nFrames=nFrames)

    sr, flows, warps = composer(target, neighbors)
    jax.block_until_ready((sr, flows, warps))

    assert sr.shape == (N, C, scale * H, scale * W), sr.shape
    assert all(f.shape == (N, 2, H, W) for f in flows)
    assert all(w.shape == (N, C, H, W) for w in warps)
    print("KERNEL_OK")
</pallas_src>

<mosaic_0001>
module attributes {stable_mosaic.version = 11 : i64} {
  func.func @_conv_direct_kernel(%arg0: i32, %arg1: memref<1x18x18x8xbf16, #tpu.memory_space<vmem>>, %arg2: memref<9x8x128xbf16, #tpu.memory_space<vmem>>, %arg3: memref<1x128xf32, #tpu.memory_space<vmem>>, %arg4: memref<1x16x16x128xbf16, #tpu.memory_space<vmem>>) attributes {dimension_semantics = [#tpu.dimension_semantics<parallel>], iteration_bounds = array<i64: 2>, scalar_prefetch = 0 : i64, scratch_operands = 0 : i64, tpu.core_type = #tpu.core_type<tc>, window_params = [{transform_indices = @transform_0, window_bounds = array<i64: 1, 18, 18, 8>}, {pipeline_mode = #tpu.pipeline_mode<synchronous>, transform_indices = @transform_1, window_bounds = array<i64: 9, 8, 128>}, {pipeline_mode = #tpu.pipeline_mode<synchronous>, transform_indices = @transform_2, window_bounds = array<i64: 1, 128>}, {transform_indices = @transform_3, window_bounds = array<i64: 1, 16, 16, 128>}]} {
    %c0 = arith.constant 0 : index
    %c0_0 = arith.constant 0 : index
    %c0_1 = arith.constant 0 : index
    %c0_2 = arith.constant 0 : index
    %0 = vector.load %arg1[%c0, %c0_0, %c0_1, %c0_2] : memref<1x18x18x8xbf16, #tpu.memory_space<vmem>>, vector<1x18x18x8xbf16>
    %cst = arith.constant 0.000000e+00 : f32
    %1 = vector.broadcast %cst : f32 to vector<256x128xf32>
    %2 = vector.extract_strided_slice %0 {offsets = [0, 0, 0, 0], sizes = [1, 16, 16, 8], strides = [1, 1, 1, 1]} : vector<1x18x18x8xbf16> to vector<1x16x16x8xbf16>
    %3 = vector.shape_cast %2 : vector<1x16x16x8xbf16> to vector<16x16x8xbf16>
    %4 = vector.shape_cast %3 : vector<16x16x8xbf16> to vector<256x8xbf16>
    %c0_3 = arith.constant 0 : index
    %c0_4 = arith.constant 0 : index
    %c0_5 = arith.constant 0 : index
    %5 = vector.load %arg2[%c0_3, %c0_4, %c0_5] : memref<9x8x128xbf16, #tpu.memory_space<vmem>>, vector<1x8x128xbf16>
    %6 = vector.shape_cast %5 : vector<1x8x128xbf16> to vector<8x128xbf16>
    %cst_6 = arith.constant dense<0.000000e+00> : vector<256x128xf32>
    %7 = tpu.matmul %4, %6, %cst_6 {dimension_numbers = #tpu.dot_dimension_numbers<[1], [0], [0], [1], [0, 0, 1, 1], [], []>} : vector<256x8xbf16>, vector<8x128xbf16>, vector<256x128xf32> -> vector<256x128xf32>
    %8 = arith.addf %1, %7 : vector<256x128xf32>
    %9 = vector.extract_strided_slice %0 {offsets = [0, 0, 1, 0], sizes = [1, 16, 16, 8], strides = [1, 1, 1, 1]} : vector<1x18x18x8xbf16> to vector<1x16x16x8xbf16>
    %10 = vector.shape_cast %9 : vector<1x16x16x8xbf16> to vector<16x16x8xbf16>
    %11 = vector.shape_cast %10 : vector<16x16x8xbf16> to vector<256x8xbf16>
    %c1 = arith.constant 1 : index
    %c0_7 = arith.constant 0 : index
    %c0_8 = arith.constant 0 : index
    %12 = vector.load %arg2[%c1, %c0_7, %c0_8] : memref<9x8x128xbf16, #tpu.memory_space<vmem>>, vector<1x8x128xbf16>
    %13 = vector.shape_cast %12 : vector<1x8x128xbf16> to vector<8x128xbf16>
    %cst_9 = arith.constant dense<0.000000e+00> : vector<256x128xf32>
    %14 = tpu.matmul %11, %13, %cst_9 {dimension_numbers = #tpu.dot_dimension_numbers<[1], [0], [0], [1], [0, 0, 1, 1], [], []>} : vector<256x8xbf16>, vector<8x128xbf16>, vector<256x128xf32> -> vector<256x128xf32>
    %15 = arith.addf %8, %14 : vector<256x128xf32>
    %16 = vector.extract_strided_slice %0 {offsets = [0, 0, 2, 0], sizes = [1, 16, 16, 8], strides = [1, 1, 1, 1]} : vector<1x18x18x8xbf16> to vector<1x16x16x8xbf16>
    %17 = vector.shape_cast %16 : vector<1x16x16x8xbf16> to vector<16x16x8xbf16>
    %18 = vector.shape_cast %17 : vector<16x16x8xbf16> to vector<256x8xbf16>
    %c2 = arith.constant 2 : index
    %c0_10 = arith.constant 0 : index
    %c0_11 = arith.constant 0 : index
    %19 = vector.load %arg2[%c2, %c0_10, %c0_11] : memref<9x8x128xbf16, #tpu.memory_space<vmem>>, vector<1x8x128xbf16>
    %20 = vector.shape_cast %19 : vector<1x8x128xbf16> to vector<8x128xbf16>
    %cst_12 = arith.constant dense<0.000000e+00> : vector<256x128xf32>
    %21 = tpu.matmul %18, %20, %cst_12 {dimension_numbers = #tpu.dot_dimension_numbers<[1], [0], [0], [1], [0, 0, 1, 1], [], []>} : vector<256x8xbf16>, vector<8x128xbf16>, vector<256x128xf32> -> vector<256x128xf32>
    %22 = arith.addf %15, %21 : vector<256x128xf32>
    %23 = vector.extract_strided_slice %0 {offsets = [0, 1, 0, 0], sizes = [1, 16, 16, 8], strides = [1, 1, 1, 1]} : vector<1x18x18x8xbf16> to vector<1x16x16x8xbf16>
    %24 = vector.shape_cast %23 : vector<1x16x16x8xbf16> to vector<16x16x8xbf16>
    %25 = vector.shape_cast %24 : vector<16x16x8xbf16> to vector<256x8xbf16>
    %c3 = arith.constant 3 : index
    %c0_13 = arith.constant 0 : index
    %c0_14 = arith.constant 0 : index
    %26 = vector.load %arg2[%c3, %c0_13, %c0_14] : memref<9x8x128xbf16, #tpu.memory_space<vmem>>, vector<1x8x128xbf16>
    %27 = vector.shape_cast %26 : vector<1x8x128xbf16> to vector<8x128xbf16>
    %cst_15 = arith.constant dense<0.000000e+00> : vector<256x128xf32>
    %28 = tpu.matmul %25, %27, %cst_15 {dimension_numbers = #tpu.dot_dimension_numbers<[1], [0], [0], [1], [0, 0, 1, 1], [], []>} : vector<256x8xbf16>, vector<8x128xbf16>, vector<256x128xf32> -> vector<256x128xf32>
    %29 = arith.addf %22, %28 : vector<256x128xf32>
    %30 = vector.extract_strided_slice %0 {offsets = [0, 1, 1, 0], sizes = [1, 16, 16, 8], strides = [1, 1, 1, 1]} : vector<1x18x18x8xbf16> to vector<1x16x16x8xbf16>
    %31 = vector.shape_cast %30 : vector<1x16x16x8xbf16> to vector<16x16x8xbf16>
    %32 = vector.shape_cast %31 : vector<16x16x8xbf16> to vector<256x8xbf16>
    %c4 = arith.constant 4 : index
    %c0_16 = arith.constant 0 : index
    %c0_17 = arith.constant 0 : index
    %33 = vector.load %arg2[%c4, %c0_16, %c0_17] : memref<9x8x128xbf16, #tpu.memory_space<vmem>>, vector<1x8x128xbf16>
    %34 = vector.shape_cast %33 : vector<1x8x128xbf16> to vector<8x128xbf16>
    %cst_18 = arith.constant dense<0.000000e+00> : vector<256x128xf32>
    %35 = tpu.matmul %32, %34, %cst_18 {dimension_numbers = #tpu.dot_dimension_numbers<[1], [0], [0], [1], [0, 0, 1, 1], [], []>} : vector<256x8xbf16>, vector<8x128xbf16>, vector<256x128xf32> -> vector<256x128xf32>
    %36 = arith.addf %29, %35 : vector<256x128xf32>
    %37 = vector.extract_strided_slice %0 {offsets = [0, 1, 2, 0], sizes = [1, 16, 16, 8], strides = [1, 1, 1, 1]} : vector<1x18x18x8xbf16> to vector<1x16x16x8xbf16>
    %38 = vector.shape_cast %37 : vector<1x16x16x8xbf16> to vector<16x16x8xbf16>
    %39 = vector.shape_cast %38 : vector<16x16x8xbf16> to vector<256x8xbf16>
    %c5 = arith.constant 5 : index
    %c0_19 = arith.constant 0 : index
    %c0_20 = arith.constant 0 : index
    %40 = vector.load %arg2[%c5, %c0_19, %c0_20] : memref<9x8x128xbf16, #tpu.memory_space<vmem>>, vector<1x8x128xbf16>
    %41 = vector.shape_cast %40 : vector<1x8x128xbf16> to vector<8x128xbf16>
    %cst_21 = arith.constant dense<0.000000e+00> : vector<256x128xf32>
    %42 = tpu.matmul %39, %41, %cst_21 {dimension_numbers = #tpu.dot_dimension_numbers<[1], [0], [0], [1], [0, 0, 1, 1], [], []>} : vector<256x8xbf16>, vector<8x128xbf16>, vector<256x128xf32> -> vector<256x128xf32>
    %43 = arith.addf %36, %42 : vector<256x128xf32>
    %44 = vector.extract_strided_slice %0 {offsets = [0, 2, 0, 0], sizes = [1, 16, 16, 8], strides = [1, 1, 1, 1]} : vector<1x18x18x8xbf16> to vector<1x16x16x8xbf16>
    %45 = vector.shape_cast %44 : vector<1x16x16x8xbf16> to vector<16x16x8xbf16>
    %46 = vector.shape_cast %45 : vector<16x16x8xbf16> to vector<256x8xbf16>
    %c6 = arith.constant 6 : index
    %c0_22 = arith.constant 0 : index
    %c0_23 = arith.constant 0 : index
    %47 = vector.load %arg2[%c6, %c0_22, %c0_23] : memref<9x8x128xbf16, #tpu.memory_space<vmem>>, vector<1x8x128xbf16>
    %48 = vector.shape_cast %47 : vector<1x8x128xbf16> to vector<8x128xbf16>
    %cst_24 = arith.constant dense<0.000000e+00> : vector<256x128xf32>
    %49 = tpu.matmul %46, %48, %cst_24 {dimension_numbers = #tpu.dot_dimension_numbers<[1], [0], [0], [1], [0, 0, 1, 1], [], []>} : vector<256x8xbf16>, vector<8x128xbf16>, vector<256x128xf32> -> vector<256x128xf32>
    %50 = arith.addf %43, %49 : vector<256x128xf32>
    %51 = vector.extract_strided_slice %0 {offsets = [0, 2, 1, 0], sizes = [1, 16, 16, 8], strides = [1, 1, 1, 1]} : vector<1x18x18x8xbf16> to vector<1x16x16x8xbf16>
    %52 = vector.shape_cast %51 : vector<1x16x16x8xbf16> to vector<16x16x8xbf16>
    %53 = vector.shape_cast %52 : vector<16x16x8xbf16> to vector<256x8xbf16>
    %c7 = arith.constant 7 : index
    %c0_25 = arith.constant 0 : index
    %c0_26 = arith.constant 0 : index
    %54 = vector.load %arg2[%c7, %c0_25, %c0_26] : memref<9x8x128xbf16, #tpu.memory_space<vmem>>, vector<1x8x128xbf16>
    %55 = vector.shape_cast %54 : vector<1x8x128xbf16> to vector<8x128xbf16>
    %cst_27 = arith.constant dense<0.000000e+00> : vector<256x128xf32>
    %56 = tpu.matmul %53, %55, %cst_27 {dimension_numbers = #tpu.dot_dimension_numbers<[1], [0], [0], [1], [0, 0, 1, 1], [], []>} : vector<256x8xbf16>, vector<8x128xbf16>, vector<256x128xf32> -> vector<256x128xf32>
    %57 = arith.addf %50, %56 : vector<256x128xf32>
    %58 = vector.extract_strided_slice %0 {offsets = [0, 2, 2, 0], sizes = [1, 16, 16, 8], strides = [1, 1, 1, 1]} : vector<1x18x18x8xbf16> to vector<1x16x16x8xbf16>
    %59 = vector.shape_cast %58 : vector<1x16x16x8xbf16> to vector<16x16x8xbf16>
    %60 = vector.shape_cast %59 : vector<16x16x8xbf16> to vector<256x8xbf16>
    %c8 = arith.constant 8 : index
    %c0_28 = arith.constant 0 : index
    %c0_29 = arith.constant 0 : index
    %61 = vector.load %arg2[%c8, %c0_28, %c0_29] : memref<9x8x128xbf16, #tpu.memory_space<vmem>>, vector<1x8x128xbf16>
    %62 = vector.shape_cast %61 : vector<1x8x128xbf16> to vector<8x128xbf16>
    %cst_30 = arith.constant dense<0.000000e+00> : vector<256x128xf32>
    %63 = tpu.matmul %60, %62, %cst_30 {dimension_numbers = #tpu.dot_dimension_numbers<[1], [0], [0], [1], [0, 0, 1, 1], [], []>} : vector<256x8xbf16>, vector<8x128xbf16>, vector<256x128xf32> -> vector<256x128xf32>
    %64 = arith.addf %57, %63 : vector<256x128xf32>
    %c0_31 = arith.constant 0 : index
    %c0_32 = arith.constant 0 : index
    %65 = vector.load %arg3[%c0_31, %c0_32] : memref<1x128xf32, #tpu.memory_space<vmem>>, vector<1x128xf32>
    %66 = vector.broadcast %65 : vector<1x128xf32> to vector<256x128xf32>
    %67 = arith.addf %64, %66 : vector<256x128xf32>
    %cst_33 = arith.constant 0.000000e+00 : f32
    %68 = vector.broadcast %cst_33 : f32 to vector<256x128xf32>
    %69 = arith.cmpf oge, %67, %68 : vector<256x128xf32>
    %cst_34 = arith.constant 2.500000e-01 : f32
    %70 = vector.broadcast %cst_34 : f32 to vector<256x128xf32>
    %71 = arith.mulf %70, %67 : vector<256x128xf32>
    %72 = arith.select %69, %67, %71 : vector<256x128xi1>, vector<256x128xf32>
    %73 = vector.shape_cast %72 : vector<256x128xf32> to vector<1x16x16x128xf32>
    %74 = arith.truncf %73 : vector<1x16x16x128xf32> to vector<1x16x16x128xbf16>
    %c0_35 = arith.constant 0 : index
    %c0_36 = arith.constant 0 : index
    %c0_37 = arith.constant 0 : index
    %c0_38 = arith.constant 0 : index
    %75 = vector.load %arg4[%c0_35, %c0_36, %c0_37, %c0_38] : memref<1x16x16x128xbf16, #tpu.memory_space<vmem>>, vector<1x16x16x128xbf16>
    tpu.vector_store %arg4[%c0_35, %c0_36, %c0_37, %c0_38], %74 {strides = array<i32>} : memref<1x16x16x128xbf16, #tpu.memory_space<vmem>>, vector<1x16x16x128xbf16>,
    return
  }
  func.func @transform_0(%arg0: i32) -> (i32, i32, i32, i32) {
    %c0_i32 = arith.constant 0 : i32
    %c0_i32_0 = arith.constant 0 : i32
    %c0_i32_1 = arith.constant 0 : i32
    %c0_i32_2 = arith.constant 0 : i32
    return %arg0, %c0_i32, %c0_i32_0, %c0_i32_1 : i32, i32, i32, i32
  }
  func.func @transform_1(%arg0: i32) -> (i32, i32, i32) {
    %c0_i32 = arith.constant 0 : i32
    %c0_i32_0 = arith.constant 0 : i32
    %c0_i32_1 = arith.constant 0 : i32
    %c0_i32_2 = arith.constant 0 : i32
    return %c0_i32, %c0_i32_0, %c0_i32_1 : i32, i32, i32
  }
  func.func @transform_2(%arg0: i32) -> (i32, i32) {
    %c0_i32 = arith.constant 0 : i32
    %c0_i32_0 = arith.constant 0 : i32
    %c0_i32_1 = arith.constant 0 : i32
    return %c0_i32, %c0_i32_0 : i32, i32
  }
  func.func @transform_3(%arg0: i32) -> (i32, i32, i32, i32) {
    %c0_i32 = arith.constant 0 : i32
    %c0_i32_0 = arith.constant 0 : i32
    %c0_i32_1 = arith.constant 0 : i32
    %c0_i32_2 = arith.constant 0 : i32
    return %arg0, %c0_i32, %c0_i32_0, %c0_i32_1 : i32, i32, i32, i32
  }
}

</mosaic_0001>

<bundles_post_ra>
// kernel: tpu_custom_call.1
= control target key start
LH: loop header
LB: loop body
LE: loop exit
PB: predicated region body
PF: predicated region fallthrough
CT: control target
= control target key end

     0   :  { %8 = vsyncpa [#allocation3], 0  ;;  %s5813_s0 = inlined_call_operand.vmem [shape: bf16[2,18,18,8], index: 0, kind: input, shape index: {}]   ;;  %s5814_s1 = inlined_call_operand.vmem [shape: bf16[9,8,128], index: 1, kind: input, shape index: {}]   ;;  %s5815_s2 = inlined_call_operand.vmem [shape: f32[1,128], index: 2, kind: input, shape index: {}]   ;;  %s5816_s3 = inlined_call_operand.hbm [shape: bf16[2,16,16,128], index: 3, kind: output, shape index: {}]  }
   0x1   :  { %10 = vsyncpa [#allocation3 + $0x1], 0  ;;  %s4268_s12 = smov 0   ;;  %s4270_s13 = smov 0  }
   0x2   :  { %s4272_s14 = smov 0   ;;  %s4274_s15 = smov 0  }
   0x3 LB: > { %s4289_s16 = sadd.s32 4294967295, %s4243_s15   ;;  %s3256_s17 = sadd.s32 4294967294, %s4243_s15   ;;  %s4243_s15 = sphi %s4274_s15, %s5970_s15   ;;  %s4239_s14 = sphi %s4272_s14, %s5969_s14   ;;  %s4235_s13 = sphi %s4270_s13, %s5968_s13   ;;  %s4231_s12 = sphi %s4268_s12, %s5967_s12  }
   0x4   : > { %s4293_s18 = sadd.s32 1, %s4243_s15   ;;  %s91_s19 = sadd.s32 1, %s4239_s14 }
   0x5   : > { %s88_s20 = ssub.s32 %s4243_s15, %s4293_s18  ;;  %p101_p0 = scmp.ne.s32.totalorder %s4239_s14, %s4235_s13 }
   0x6   : > { %p89_p1 = scmp.eq.s32.totalorder %s88_s20, 0  ;;  %p102_p2 = scmp.eq.s32.totalorder %s4289_s16, 1 }
   0x7   : > { %p107_p3 = scmp.ne.s32.totalorder %s4235_s13, %s4231_s12  ;;  %p108_p4 = scmp.eq.s32.totalorder %s3256_s17, 1 }
   0x8   : > { %s4304_s21 = scalar_select %p89_p1, %s4239_s14, %s91_s19  }
   0x9   : > { %p4306_p5 = por %p102_p2, %p101_p0  ;;  %p4310_p6 = por %p108_p4, %p107_p3 }
   0xa   : > { %p3259_p7 = scmp.ge.s32.totalorder %s4243_s15, 1  ;;  %p140_p8 = scmp.lt.s32.totalorder %s4243_s15, 3 }
   0xc   : > { %p141_p9 = pnand %p3259_p7, %p140_p8 }
   0xe   : > { %144 = sbr.rel (%p141_p9) target bundleno = 581 (0x245), region = 32 }
  0x13   : > { %v3262_v0 = vld [vmem:[%s5814_s1 + $0x4] sm:$0xf]  ;;  %vm711_vm0 = vcmask 1043456   ;;  %p164_p10 = scmp.lt.s32.totalorder %s4289_s16, 1  ;;  %v224_v2 = vld [vmem:[%s5814_s1] sm:$0xf] }
  0x14   : > { %4114 = vmatprep.subr.msk.bf16.mxu1 %vm711_vm0, %v3262_v0  ;;  %4113 = vmatprep.subr.msk.bf16.mxu0 %vm711_vm0, %v3262_v0  ;;  %v713_v1 = vsel %vm711_vm0, %v3262_v0, 0  ;;  %v3343_v3 = vld [vmem:[%s5814_s1 + $0x8] sm:$0xf]  ;;  %vm225_vm1 = vsmask.f32 3328  ;;  %v4338_v4 = vsel %vm711_vm0, %v224_v2, 0 }
  0x15   : > { %4112 = vmatpush3.bf16.msra.mxu1 %v713_v1  ;;  %3806 = vmatpush3.bf16.msra.mxu0 %v713_v1  ;;  %s165_s28 = scalar_select %p164_p10, %s4289_s16, 1  ;;  %vm226_vm2 = vsmask.f32 7440  ;;  %v4341_v5 = vsel %vm711_vm0, %v3343_v3, 0  ;;  %vm662_vm3 = vcmask 64512   ;;  %v5862_v32 = vmov 0 }
  0x16   : > { %4115 = vmatprep.subr.msk.bf16.mxu1 %vm711_vm0, %v224_v2  ;;  %4116 = vmatprep.subr.msk.bf16.mxu0 %vm711_vm0, %v3343_v3  ;;  %vm4380_vm4 = vmor %vm225_vm1, %vm226_vm2  ;;  %vm1184_vm5 = vcmask 1042432   ;;  %vm1185_vm6 = vcmask 1046532   ;;  %s4245_s19 = smov [#allocation2]  }
  0x17   : > { %s4123_s4 = smul.u32 216, %s165_s28  ;;  %v5863_v32 = vsel %vm4380_vm4, 4294967295, %v5862_v32  ;;  %vm4703_vm7 = vmor %vm1184_vm5, %vm1185_vm6  ;;  %s4187_s20 = sshll.u32 %s4245_s19, 4  ;;  %s4188_s20 = int_to_ptr.vmem [resolvable:$false] %s4187_s20 }
  0x18   : > { %5864 = vst [vmem:[#allocation5_spill] sm:$0xff] %v5863_v32  ;;  %s4189_s24 = scalar_lea.vmem %s4188_s20, 4096 }
  0x19   : > { %s4335_s7 = scalar_lea.vmem %s5813_s0, %s4123_s4  ;;  %s161_s4 = sand.u32 1, %s4235_s13  }
  0x1a   : > { %v4344_v6 = vld [vmem:[%s4335_s7] sm:$0xf]  ;;  %v4347_v7 = vld [vmem:[%s4335_s7 + $0x4] sm:$0xf]  ;;  %v4350_v8 = vld [vmem:[%s4335_s7 + $0x8] sm:$0x1] }
  0x1b   : > { %v229_v9 = vshrl.u32 %v4344_v6, 16  ;;  %v232_v10 = vshll.u32 %v4344_v6, 16  ;;  %v238_v11 = vshll.u32 %v4347_v7, 16  ;;  %v242_v12 = vshrl.u32 %v4347_v7, 16  ;;  %v4357_v13 = vld [vmem:[%s4335_s7 + $0x60] sm:$0xf] }
  0x1c   : > { %v248_v14 = vshll.u32 %v4350_v8, 16  ;;  %v4362_v16 = vld [vmem:[%s4335_s7 + $0x64] sm:$0xf]  ;;  %v4365_v17 = vld [vmem:[%s4335_s7 + $0x68] sm:$0x1]  ;;  %v421_v23 = vshrl.u32 %v4357_v13, 16 }
  0x1d   : > { %v231_v18 = vrot.slane %v229_v9, 4  ;;  %v234_v19 = vrot.slane %v232_v10, 5  ;;  %v240_v20 = vrot.slane %v238_v11, 5  ;;  %v244_v21 = vrot.slane %v242_v12, 4  ;;  %v4373_v30 = vld [vmem:[%s4335_s7 + $0xc] sm:$0xf] }
  0x1e   : > { %v250_v22 = vrot.slane %v248_v14, 5  ;;  %v424_v24 = vshll.u32 %v4357_v13, 16  ;;  %v430_v25 = vshll.u32 %v4362_v16, 16  ;;  %v434_v28 = vshrl.u32 %v4362_v16, 16  ;;  %v4376_v31 = vld [vmem:[%s4335_s7 + $0x10] sm:$0xf] }
  0x1f   : > { %v235_v26 = vor.u32 %v234_v19, %v231_v18  ;;  %v245_v27 = vor.u32 %v244_v21, %v240_v20  ;;  %v440_v29 = vshll.u32 %v4365_v17, 16  ;;  %v423_v33 = vrot.slane %v421_v23, 4  ;;  %v4387_v42 = vld [vmem:[%s4335_s7 + $0x14] sm:$0x1]  ;;  %v4398_v54 = vld [vmem:[%s4335_s7 + $0x6c] sm:$0xf] }
  0x20   : > { %v426_v34 = vrot.slane %v424_v24, 5  ;;  %v432_v35 = vrot.slane %v430_v25, 5  ;;  %v436_v39 = vrot.slane %v434_v28, 4  ;;  %v253_v43 = vshrl.u32 %v4373_v30, 16  ;;  %5865 = vst [vmem:[#allocation6_spill] sm:$0xff] %v4398_v54  ;;  %s3260_s5 = sshll.u32 %s161_s4, 7 }
  0x21   : > { %v236_v37 = vrot.slane %v235_v26, 4  ;;  %v246_v38 = vrot.slane %v245_v27, 4  ;;  %v442_v40 = vrot.slane %v440_v29, 5  ;;  %v256_v44 = vshll.u32 %v4373_v30, 16  ;;  %v4402_v59 = vld [vmem:[%s4335_s7 + $0x70] sm:$0xf] }
  0x22   : > { %v427_v41 = vor.u32 %v426_v34, %v423_v33  ;;  %v262_v45 = vshll.u32 %v4376_v31, 16  ;;  %v437_v48 = vor.u32 %v436_v39, %v432_v35  ;;  %v266_v49 = vshrl.u32 %v4376_v31, 16  ;;  %v4410_v0 = vld [vmem:[%s4335_s7 + $0x74] sm:$0x1]  ;;  %v4416_v10 = vld [vmem:[%s4335_s7 + $0x18] sm:$0xf] }
  0x23   : > { %v241_v46 = vsel %vm4380_vm4, %v236_v37, %v240_v20  ;;  %v251_v47 = vsel %vm4380_vm4, %v246_v38, %v250_v22  ;;  %v255_v52 = vrot.slane %v253_v43, 4  ;;  %v258_v53 = vrot.slane %v256_v44, 5  ;;  %5866 = vst [vmem:[#allocation7_spill] sm:$0xff] %v4410_v0  ;;  %v4425_v23 = vld [vmem:[%s4335_s7 + $0x1c] sm:$0xf]  ;;  %s5668_s6 = scalar_lea.vmem [#allocation2], %s3260_s5 }
  0x24   : > { %v3263_v50 = vcombine.low %v241_v46, %v251_v47  ;;  %v428_v51 = vrot.slane %v427_v41, 4  ;;  %v438_v55 = vrot.slane %v437_v48, 4  ;;  %v264_v56 = vrot.slane %v262_v45, 5  ;;  %v4432_v27 = vld [vmem:[%s4335_s7 + $0x20] sm:$0x1]  ;;  %s3194_s8 = sshll.u32 %s5668_s6, 4  ;;  %s5768_s8 = int_to_ptr.vmem [resolvable:$true] %s3194_s8 }
  0x25   : > { %v268_v57 = vrot.slane %v266_v49, 4  ;;  %v272_v58 = vshll.u32 %v4387_v42, 16  ;;  %v259_v61 = vor.u32 %v258_v53, %v255_v52  ;;  %v445_v9 = vshrl.u32 %v4398_v54, 16  ;;  %v4439_v37 = vld [vmem:[%s4335_s7 + $0x78] sm:$0xf]  ;;  %s4183_s17 = scalar_lea.vmem %s5768_s8, 2048  ;;  %p4190_p0 = scmp.lt.s32.totalorder %s5768_s8, %s4188_s20 }
  0x26   : > { %3807 = vmatprep.mubr.msk.bf16.mxu0 %vm662_vm3, %v3263_v50  ;;  %v433_v60 = vsel %vm4380_vm4, %v428_v51, %v432_v35  ;;  %v443_v1 = vsel %vm4380_vm4, %v438_v55, %v442_v40  ;;  %v448_v14 = vshll.u32 %v4398_v54, 16  ;;  %v454_v18 = vshll.u32 %v4402_v59, 16  ;;  %5868 = vst [vmem:[#allocation9_spill] sm:$0xff] %v4439_v37  ;;  %v4447_v43 = vld [vmem:[%s5814_s1 + $0x10] sm:$0xf]  ;;  %p4184_p11 = scmp.ne.s32.totalorder %s5768_s8, %s4183_s17  ;;  %p4191_p1 = scmp.lt.s32.totalorder %s4189_s24, %s4183_s17 }
  0x27   : > { %v269_v2 = vor.u32 %v268_v57, %v264_v56  ;;  %v274_v3 = vrot.slane %v272_v58, 5  ;;  %v4418_v11 = vcombine.low %v433_v60, %v443_v1  ;;  %v260_v12 = vrot.slane %v259_v61, 4  ;;  %v4452_v48 = vld [vmem:[%s4335_s7 + $0x7c] sm:$0xf]  ;;  %v4460_v58 = vld [vmem:[%s4335_s7 + $0x80] sm:$0x1] }
  0x28   : > { %v447_v20 = vrot.slane %v445_v9, 4  ;;  %v458_v21 = vshrl.u32 %v4402_v59, 16  ;;  %v464_v22 = vshll.u32 %v4410_v0, 16  ;;  %v450_v25 = vrot.slane %v448_v14, 5  ;;  %5870 = vst [vmem:[#allocation11_spill] sm:$0xff] %v4452_v48  ;;  %5871 = vst [vmem:[#allocation12_spill] sm:$0xff] %v4460_v58  ;;  %p4185_p12 = pnand %p4184_p11, %p4306_p5  ;;  %p4192_p2 = por %p4191_p1, %p4190_p0 }
  0x29   : > { %5867 = vst [vmem:[#allocation8_spill] sm:$0xff] %v4418_v11  ;;  %v270_v19 = vrot.slane %v269_v2, 4  ;;  %3823 = vmatprep.mubr.msk.bf16.mxu1 %vm662_vm3, %v4418_v11  ;;  %v265_v24 = vsel %vm4380_vm4, %v260_v12, %v264_v56  ;;  %v456_v26 = vrot.slane %v454_v18, 5  ;;  %v277_v28 = vshrl.u32 %v4416_v10, 16  ;;  %v4474_v18 = vld [vmem:[%s4335_s7 + $0x28] sm:$0xf] }
  0x2a   : > { %v460_v33 = vrot.slane %v458_v21, 4  ;;  %v466_v34 = vrot.slane %v464_v22, 5  ;;  %v280_v35 = vshll.u32 %v4416_v10, 16  ;;  %v451_v39 = vor.u32 %v450_v25, %v447_v20  ;;  %p4186_p13 = pneg %p4185_p12 }
  0x2b   : > { %v275_v29 = vsel %vm4380_vm4, %v270_v19, %v274_v3  ;;  %v279_v40 = vrot.slane %v277_v28, 4  ;;  %v286_v41 = vshll.u32 %v4425_v23, 16  ;;  %v290_v46 = vshrl.u32 %v4425_v23, 16  ;;  %v4466_v3 = vld [vmem:[%s4335_s7 + $0x24] sm:$0xf] }
  0x2c   : > { %v4441_v38 = vcombine.low %v265_v24, %v275_v29  ;;  %v461_v44 = vor.u32 %v460_v33, %v456_v26  ;;  %v282_v45 = vrot.slane %v280_v35, 5  ;;  %v296_v47 = vshll.u32 %v4432_v27, 16  ;;  %v4482_v24 = vld [vmem:[%s5814_s1 + $0xc] sm:$0xf]  ;;  %p4193_p3 = pnand %p4192_p2, %p4186_p13 }
  0x2d   : > { %v452_v49 = vrot.slane %v451_v39, 4  ;;  %v288_v50 = vrot.slane %v286_v41, 5  ;;  %v469_v51 = vshrl.u32 %v4439_v37, 16  ;;  %v472_v52 = vshll.u32 %v4439_v37, 16  ;;  %v4487_v29 = vld [vmem:[%s4335_s7 + $0x2c] sm:$0x1] }
  0x2e   : > { %5869 = vst [vmem:[#allocation10_spill] sm:$0xff] %v4441_v38  ;;  %3808 = vmatmul.mubr.msk.bf16.vlgmr.msra.gmra.mxu0 %vm662_vm3, %v4441_v38  ;;  %v462_v53 = vrot.slane %v461_v44, 4  ;;  %v283_v55 = vor.u32 %v282_v45, %v279_v40  ;;  %v292_v56 = vrot.slane %v290_v46, 4  ;;  %v298_v57 = vrot.slane %v296_v47, 5  ;;  %v4495_v41 = vld [vmem:[%s4335_s7 + $0x84] sm:$0xf] }
  0x2f   : > { %3874 = vmatpush3.bf16.msra.mxu0 %v4341_v5  ;;  %v457_v60 = vsel %vm4380_vm4, %v452_v49, %v456_v26  ;;  %v471_v61 = vrot.slane %v469_v51, 4  ;;  %v474_v1 = vrot.slane %v472_v52, 5  ;;  %v478_v2 = vshll.u32 %v4452_v48, 16  ;;  %v4502_v49 = vld [vmem:[%s4335_s7 + $0x88] sm:$0xf] }
  0x30   : > { %4118 = vmatprep.subr.msk.bf16.mxu0 %vm711_vm0, %v4447_v43  ;;  %v467_v5 = vsel %vm4380_vm4, %v462_v53, %v466_v34  ;;  %v284_v9 = vrot.slane %v283_v55, 4  ;;  %v293_v12 = vor.u32 %v292_v56, %v288_v50  ;;  %v482_v14 = vshrl.u32 %v4452_v48, 16  ;;  %v4642_v38 = vld [vmem:[%s4335_s7 + $0xb0] sm:$0x1]  ;;  %v4664_v48 = vld [vmem:[%s4335_s7 + $0x5c] sm:$0x1] }
  0x31   : > { %v4476_v19 = vcombine.low %v457_v60, %v467_v5  ;;  %v475_v20 = vor.u32 %v474_v1, %v471_v61  ;;  %v480_v21 = vrot.slane %v478_v2, 5  ;;  %v488_v22 = vshll.u32 %v4460_v58, 16  ;;  %5883 = vst [vmem:[#allocation24_spill] sm:$0xff] %v4642_v38 }
  0x32   : > { %v289_v25 = vsel %vm4380_vm4, %v284_v9, %v288_v50  ;;  %v294_v26 = vrot.slane %v293_v12, 4  ;;  %v484_v28 = vrot.slane %v482_v14, 4  ;;  %v301_v33 = vshrl.u32 %v4466_v3, 16  ;;  %v4521_v9 = vld [vmem:[%s4335_s7 + $0x30] sm:$0xf] }
  0x33   : > { %5872 = vst [vmem:[#allocation13_spill] sm:$0xff] %v4476_v19  ;;  %3824 = vmatmul.mubr.msk.bf16.vlgmr.msra.gmra.mxu1 %vm662_vm3, %v4476_v19  ;;  %v476_v34 = vrot.slane %v475_v20, 4  ;;  %v490_v35 = vrot.slane %v488_v22, 5  ;;  %v304_v39 = vshll.u32 %v4466_v3, 16  ;;  %v310_v40 = vshll.u32 %v4474_v18, 16 }
  0x34   : > { %3840 = vmatpush3.bf16.msra.mxu1 %v4338_v4  ;;  %v299_v44 = vsel %vm4380_vm4, %v294_v26, %v298_v57  ;;  %v485_v45 = vor.u32 %v484_v28, %v480_v21  ;;  %v303_v46 = vrot.slane %v301_v33, 4  ;;  %v314_v47 = vshrl.u32 %v4474_v18, 16  ;;  %v4512_v57 = vld [vmem:[%s4335_s7 + $0x8c] sm:$0x1]  ;;  %v4526_v22 = vld [vmem:[%s4335_s7 + $0x34] sm:$0xf] }
  0x35   : > { %v4504_v50 = vcombine.low %v289_v25, %v299_v44  ;;  %v481_v51 = vsel %vm4380_vm4, %v476_v34, %v480_v21  ;;  %v306_v52 = vrot.slane %v304_v39, 5  ;;  %v312_v53 = vrot.slane %v310_v40, 5  ;;  %4117 = vmatprep.subr.msk.bf16.mxu1 %vm711_vm0, %v4482_v24 }
  0x36   : > { %v486_v4 = vrot.slane %v485_v45, 4  ;;  %v316_v55 = vrot.slane %v314_v47, 4  ;;  %v320_v56 = vshll.u32 %v4487_v29, 16  ;;  %v493_v60 = vshrl.u32 %v4495_v41, 16 }
  0x37   : > { %5873 = vst [vmem:[#allocation14_spill] sm:$0xff] %v4504_v50  ;;  %3811 = vmatprep.mubr.msk.bf16.mxu0 %vm662_vm3, %v4504_v50  ;;  %v307_v61 = vor.u32 %v306_v52, %v303_v46  ;;  %v496_v1 = vshll.u32 %v4495_v41, 16  ;;  %v502_v2 = vshll.u32 %v4502_v49, 16  ;;  %v506_v5 = vshrl.u32 %v4502_v49, 16  ;;  %v4537_v46 = vld [vmem:[%s4335_s7 + $0x38] sm:$0x1] }
  0x38   : > { %v491_v12 = vsel %vm4380_vm4, %v486_v4, %v490_v35  ;;  %v317_v14 = vor.u32 %v316_v55, %v312_v53  ;;  %v322_v20 = vrot.slane %v320_v56, 5  ;;  %v495_v21 = vrot.slane %v493_v60, 4  ;;  %v4542_v52 = vld [vmem:[%s4335_s7 + $0x90] sm:$0xf] }
  0x39   : > { %v4528_v25 = vcombine.low %v481_v51, %v491_v12  ;;  %v308_v26 = vrot.slane %v307_v61, 4  ;;  %v498_v28 = vrot.slane %v496_v1, 5  ;;  %v504_v33 = vrot.slane %v502_v2, 5  ;;  %v4547_v61 = vld [vmem:[%s4335_s7 + $0x94] sm:$0xf] }
  0x3a   : > { %v318_v34 = vrot.slane %v317_v14, 4  ;;  %v508_v39 = vrot.slane %v506_v5, 4  ;;  %v512_v40 = vshll.u32 %v4512_v57, 16  ;;  %v325_v44 = vshrl.u32 %v4521_v9, 16 }
  0x3b   : > { %5874 = vst [vmem:[#allocation15_spill] sm:$0xff] %v4528_v25  ;;  %3827 = vmatprep.mubr.msk.bf16.mxu1 %vm662_vm3, %v4528_v25  ;;  %v313_v35 = vsel %vm4380_vm4, %v308_v26, %v312_v53  ;;  %v499_v45 = vor.u32 %v498_v28, %v495_v21  ;;  %v328_v47 = vshll.u32 %v4521_v9, 16  ;;  %v334_v51 = vshll.u32 %v4526_v22, 16  ;;  %v4593_v25 = vld [vmem:[%s4335_s7 + $0xa0] sm:$0xf] }
  0x3c   : > { %v323_v4 = vsel %vm4380_vm4, %v318_v34, %v322_v20  ;;  %v509_v55 = vor.u32 %v508_v39, %v504_v33  ;;  %v514_v56 = vrot.slane %v512_v40, 5  ;;  %v327_v60 = vrot.slane %v325_v44, 4  ;;  %v4559_v34 = vld [vmem:[%s4335_s7 + $0x98] sm:$0x1]  ;;  %v4564_v44 = vld [vmem:[%s4335_s7 + $0x3c] sm:$0xf] }
  0x3d   : > { %v4549_v53 = vcombine.low %v313_v35, %v323_v4  ;;  %v500_v1 = vrot.slane %v499_v45, 4  ;;  %v330_v2 = vrot.slane %v328_v47, 5  ;;  %v336_v5 = vrot.slane %v334_v51, 5  ;;  %v4569_v4 = vld [vmem:[%s4335_s7 + $0x40] sm:$0xf] }
  0x3e   : > { %v510_v12 = vrot.slane %v509_v55, 4  ;;  %v338_v14 = vshrl.u32 %v4526_v22, 16  ;;  %v344_v21 = vshll.u32 %v4537_v46, 16  ;;  %v517_v20 = vshrl.u32 %v4542_v52, 16 }
  0x3f   : > { %5875 = vst [vmem:[#allocation16_spill] sm:$0xff] %v4549_v53  ;;  %3812 = vmatmul.mubr.msk.bf16.gmra.mxu0 %vm662_vm3, %v4549_v53  ;;  %v505_v26 = vsel %vm4380_vm4, %v500_v1, %v504_v33  ;;  %v331_v28 = vor.u32 %v330_v2, %v327_v60  ;;  %v520_v39 = vshll.u32 %v4542_v52, 16  ;;  %v526_v40 = vshll.u32 %v4547_v61, 16 }
  0x40   : > { %v515_v35 = vsel %vm4380_vm4, %v510_v12, %v514_v56  ;;  %v340_v45 = vrot.slane %v338_v14, 4  ;;  %v346_v47 = vrot.slane %v344_v21, 5  ;;  %v519_v51 = vrot.slane %v517_v20, 4  ;;  %v4581_v14 = vld [vmem:[%s4335_s7 + $0x44] sm:$0x1] }
  0x41   : > { %v4571_v33 = vcombine.low %v505_v26, %v515_v35  ;;  %v332_v55 = vrot.slane %v331_v28, 4  ;;  %v522_v60 = vrot.slane %v520_v39, 5  ;;  %v528_v1 = vrot.slane %v526_v40, 5  ;;  %v4586_v26 = vld [vmem:[%s4335_s7 + $0x9c] sm:$0xf] }
  0x42   : > { %v341_v2 = vor.u32 %v340_v45, %v336_v5  ;;  %v530_v36 = vshrl.u32 %v4547_v61, 16  ;;  %v536_v63 = vshll.u32 %v4559_v34, 16  ;;  %v349_v15 = vshrl.u32 %v4564_v44, 16 }
  0x43   : > { %5876 = vst [vmem:[#allocation17_spill] sm:$0xff] %v4571_v33  ;;  %3828 = vmatmul.mubr.msk.bf16.gmra.mxu1 %vm662_vm3, %v4571_v33  ;;  %v337_v56 = vsel %vm4380_vm4, %v332_v55, %v336_v5  ;;  %v523_v12 = vor.u32 %v522_v60, %v519_v51  ;;  %v352_v21 = vshll.u32 %v4564_v44, 16  ;;  %v358_v20 = vshll.u32 %v4569_v4, 16 }
  0x44   : > { %v342_v28 = vrot.slane %v341_v2, 4  ;;  %v532_v39 = vrot.slane %v530_v36, 4  ;;  %v538_v40 = vrot.slane %v536_v63, 5  ;;  %v351_v35 = vrot.slane %v349_v15, 4 }
  0x45   : > { %v524_v45 = vrot.slane %v523_v12, 4  ;;  %v354_v62 = vrot.slane %v352_v21, 5  ;;  %v360_v33 = vrot.slane %v358_v20, 5  ;;  %v362_v5 = vshrl.u32 %v4569_v4, 16  ;;  %v4601_v21 = vld [vmem:[%s4335_s7 + $0xa4] sm:$0x1] }
  0x46   : > { %v347_v51 = vsel %vm4380_vm4, %v342_v28, %v346_v47  ;;  %v533_v55 = vor.u32 %v532_v39, %v528_v1  ;;  %v368_v60 = vshll.u32 %v4581_v14, 16  ;;  %v541_v2 = vshrl.u32 %v4586_v26, 16  ;;  %5878 = vst [vmem:[#allocation19_spill] sm:$0xff] %v4601_v21  ;;  %v4604_v20 = vld [vmem:[%s4335_s7 + $0x48] sm:$0xf] }
  0x47   : > { %v4596_v36 = vcombine.low %v337_v56, %v347_v51  ;;  %v529_v15 = vsel %vm4380_vm4, %v524_v45, %v528_v1  ;;  %v355_v63 = vor.u32 %v354_v62, %v351_v35  ;;  %v364_v12 = vrot.slane %v362_v5, 4 }
  0x48   : > { %v534_v47 = vrot.slane %v533_v55, 4  ;;  %v370_v28 = vrot.slane %v368_v60, 5  ;;  %v543_v39 = vrot.slane %v541_v2, 4  ;;  %v544_v19 = vshll.u32 %v4586_v26, 16  ;;  %v4615_v55 = vld [vmem:[%s4335_s7 + $0x4c] sm:$0xf] }
  0x49   : > { %5877 = vst [vmem:[#allocation18_spill] sm:$0xff] %v4596_v36  ;;  %3815 = vmatprep.mubr.msk.bf16.mxu0 %vm662_vm3, %v4596_v36  ;;  %v356_v56 = vrot.slane %v355_v63, 4  ;;  %v365_v51 = vor.u32 %v364_v12, %v360_v33  ;;  %v550_v1 = vshll.u32 %v4593_v25, 16  ;;  %v554_v62 = vshrl.u32 %v4593_v25, 16  ;;  %v4623_v36 = vld [vmem:[%s4335_s7 + $0x50] sm:$0x1] }
  0x4a   : > { %v539_v35 = vsel %vm4380_vm4, %v534_v47, %v538_v40  ;;  %v546_v45 = vrot.slane %v544_v19, 5  ;;  %v560_v5 = vshll.u32 %v4601_v21, 16  ;;  %v373_v60 = vshrl.u32 %v4604_v20, 16  ;;  %v4626_v47 = vld [vmem:[%s4335_s7 + $0xa8] sm:$0xf] }
  0x4b   : > { %v4618_v2 = vcombine.low %v529_v15, %v539_v35  ;;  %v361_v63 = vsel %vm4380_vm4, %v356_v56, %v360_v33  ;;  %v366_v12 = vrot.slane %v365_v51, 4  ;;  %v552_v11 = vrot.slane %v550_v1, 5  ;;  %5880 = vst [vmem:[#allocation21_spill] sm:$0xff] %v4626_v47 }
  0x4c   : > { %v547_v53 = vor.u32 %v546_v45, %v543_v39  ;;  %v556_v50 = vrot.slane %v554_v62, 4  ;;  %v562_v40 = vrot.slane %v560_v5, 5  ;;  %v375_v19 = vrot.slane %v373_v60, 4  ;;  %v4639_v45 = vld [vmem:[%s4335_s7 + $0xac] sm:$0xf] }
  0x4d   : > { %5879 = vst [vmem:[#allocation20_spill] sm:$0xff] %v4618_v2  ;;  %3831 = vmatprep.mubr.msk.bf16.mxu1 %vm662_vm3, %v4618_v2  ;;  %v371_v15 = vsel %vm4380_vm4, %v366_v12, %v370_v28  ;;  %v376_v33 = vshll.u32 %v4604_v20, 16  ;;  %v382_v56 = vshll.u32 %v4615_v55, 16  ;;  %v386_v51 = vshrl.u32 %v4615_v55, 16  ;;  %5882 = vst [vmem:[#allocation23_spill] sm:$0xff] %v4639_v45 }
  0x4e   : > { %v4635_v1 = vcombine.low %v361_v63, %v371_v15  ;;  %v548_v39 = vrot.slane %v547_v53, 4  ;;  %v557_v62 = vor.u32 %v556_v50, %v552_v11  ;;  %v392_v35 = vshll.u32 %v4623_v36, 16 }
  0x4f   : > { %v378_v5 = vrot.slane %v376_v33, 5  ;;  %v384_v60 = vrot.slane %v382_v56, 5  ;;  %v388_v2 = vrot.slane %v386_v51, 4  ;;  %v565_v28 = vshrl.u32 %v4626_v47, 16  ;;  %v4652_v51 = vld [vmem:[%s4335_s7 + $0x54] sm:$0xf] }
  0x50   : > { %5881 = vst [vmem:[#allocation22_spill] sm:$0xff] %v4635_v1  ;;  %3816 = vmatmul.mubr.msk.bf16.gmra.mxu0 %vm662_vm3, %v4635_v1  ;;  %v553_v53 = vsel %vm4380_vm4, %v548_v39, %v552_v11  ;;  %v558_v50 = vrot.slane %v557_v62, 4  ;;  %v394_v63 = vrot.slane %v392_v35, 5  ;;  %v568_v12 = vshll.u32 %v4626_v47, 16  ;;  %v4659_v62 = vld [vmem:[%s4335_s7 + $0x58] sm:$0xf] }
  0x51   : > { %v379_v15 = vor.u32 %v378_v5, %v375_v19  ;;  %v389_v58 = vor.u32 %v388_v2, %v384_v60  ;;  %v567_v33 = vrot.slane %v565_v28, 4  ;;  %v574_v56 = vshll.u32 %v4639_v45, 16 }
  0x52   : > { %v563_v1 = vsel %vm4380_vm4, %v558_v50, %v562_v40  ;;  %v570_v37 = vrot.slane %v568_v12, 5  ;;  %v578_v11 = vshrl.u32 %v4639_v45, 16  ;;  %v584_v39 = vshll.u32 %v4642_v38, 16 }
  0x53   : > { %v4661_v2 = vcombine.low %v553_v53, %v563_v1  ;;  %v380_v19 = vrot.slane %v379_v15, 4  ;;  %v390_v35 = vrot.slane %v389_v58, 4  ;;  %v576_v5 = vrot.slane %v574_v56, 5 }
  0x54   : > { %v571_v28 = vor.u32 %v570_v37, %v567_v33  ;;  %v580_v0 = vrot.slane %v578_v11, 4  ;;  %v586_v54 = vrot.slane %v584_v39, 5  ;;  %v397_v40 = vshrl.u32 %v4652_v51, 16  ;;  %v4676_v37 = vld [vmem:[%s4335_s7 + $0xb4] sm:$0xf] }
  0x55   : > { %5884 = vst [vmem:[#allocation25_spill] sm:$0xff] %v4661_v2  ;;  %3832 = vmatmul.mubr.msk.bf16.gmra.mxu1 %vm662_vm3, %v4661_v2  ;;  %v385_v50 = vsel %vm4380_vm4, %v380_v19, %v384_v60  ;;  %v395_v1 = vsel %vm4380_vm4, %v390_v35, %v394_v63  ;;  %v400_v58 = vshll.u32 %v4652_v51, 16  ;;  %v406_v53 = vshll.u32 %v4659_v62, 16  ;;  %5885 = vst [vmem:[#allocation26_spill] sm:$0xff] %v4676_v37  ;;  %v4681_v11 = vld [vmem:[%s4335_s7 + $0xb8] sm:$0xf] }
  0x56   : > { %v4678_v12 = vcombine.low %v385_v50, %v395_v1  ;;  %v572_v15 = vrot.slane %v571_v28, 4  ;;  %v581_v33 = vor.u32 %v580_v0, %v576_v5  ;;  %v399_v56 = vrot.slane %v397_v40, 4 }
  0x57   : > { %v402_v39 = vrot.slane %v400_v58, 5  ;;  %v408_v2 = vrot.slane %v406_v53, 5  ;;  %v410_v60 = vshrl.u32 %v4659_v62, 16  ;;  %v416_v63 = vshll.u32 %v4664_v48, 16  ;;  %v4692_v58 = vld [vmem:[%s4335_s7 + $0xbc] sm:$0x1] }
  0x58   : > { %5886 = vst [vmem:[#allocation27_spill] sm:$0xff] %v4678_v12  ;;  %3819 = vmatprep.mubr.msk.bf16.mxu0 %vm662_vm3, %v4678_v12  ;;  %v577_v19 = vsel %vm4380_vm4, %v572_v15, %v576_v5  ;;  %v582_v35 = vrot.slane %v581_v33, 4  ;;  %v589_v28 = vshrl.u32 %v4676_v37, 16  ;;  %v592_v0 = vshll.u32 %v4676_v37, 16 }
  0x59   : > { %v403_v40 = vor.u32 %v402_v39, %v399_v56  ;;  %v412_v50 = vrot.slane %v410_v60, 4  ;;  %v418_v1 = vrot.slane %v416_v63, 5  ;;  %v598_v53 = vshll.u32 %v4681_v11, 16 }
  0x5a   : > { %v587_v38 = vsel %vm4380_vm4, %v582_v35, %v586_v54  ;;  %v591_v47 = vrot.slane %v589_v28, 4  ;;  %v594_v12 = vrot.slane %v592_v0, 5  ;;  %v602_v45 = vshrl.u32 %v4681_v11, 16 }
  0x5b   : > { %v4698_v5 = vcombine.low %v577_v19, %v587_v38  ;;  %v404_v15 = vrot.slane %v403_v40, 4  ;;  %v413_v33 = vor.u32 %v412_v50, %v408_v2  ;;  %v600_v21 = vrot.slane %v598_v53, 5 }
  0x5c   : > { %v595_v37 = vor.u32 %v594_v12, %v591_v47  ;;  %v604_v56 = vrot.slane %v602_v45, 4  ;;  %v608_v39 = vshll.u32 %v4692_v58, 16  ;;  %v3327_v54 = vrot.slane %v4344_v6, 9 }
  0x5d   : > { %3835 = vmatprep.mubr.msk.bf16.mxu1 %vm662_vm3, %v4698_v5  ;;  %v409_v38 = vsel %vm4380_vm4, %v404_v15, %v408_v2  ;;  %v414_v63 = vrot.slane %v413_v33, 4  ;;  %v1189_v47 = vrot.slane %v4347_v7, 5  ;;  %v4715_v45 = vcombine.low %v4373_v30, %v4376_v31 }
  0x5e   : > { %v596_v12 = vrot.slane %v595_v37, 4  ;;  %v605_v19 = vor.u32 %v604_v56, %v600_v21  ;;  %v610_v35 = vrot.slane %v608_v39, 5  ;;  %v3328_v28 = vrot.slane %v4373_v30, 9 }
  0x5f   : > { %v419_v0 = vsel %vm4380_vm4, %v414_v63, %v418_v1  ;;  %v1190_v40 = vsel %vm4703_vm7, %v3327_v54, %v1189_v47  ;;  %v1191_v50 = vrot.slane %v1189_v47, 4  ;;  %v5889_v2 = vrot.slane %v4376_v31, 5 }
  0x60   : > { %v4724_v15 = vcombine.low %v409_v38, %v419_v0  ;;  %v601_v33 = vsel %vm4380_vm4, %v596_v12, %v600_v21  ;;  %v606_v37 = vrot.slane %v605_v19, 4  ;;  %v5891_v1 = vrot.slane %v4350_v8, 5 }
  0x61   : > { %v1198_v53 = vrot.slane %v5889_v2, 4  ;;  %v5890_v56 = vmov %v5889_v2  ;;  %v5892_v54 = vrot.slane %v4387_v42, 5  ;;  %v4742_v63 = vcombine.low %v4416_v10, %v4425_v23 }
  0x62   : > { %v1197_v30 = vsel %vm4703_vm7, %v3328_v28, %v5890_v56  ;;  %v1193_v39 = vsel %vm4703_vm7, %v1191_v50, %v5891_v1  ;;  %v3329_v21 = vrot.slane %v4416_v10, 9  ;;  %3820 = vmatmul.mubr.msk.bf16.gmra.mxu0 %vm662_vm3, %v4724_v15  ;;  %v611_v8 = vsel %vm4380_vm4, %v606_v37, %v610_v35 }
  0x63   : > { %v1200_v38 = vsel %vm4703_vm7, %v1198_v53, %v5892_v54  ;;  %v3344_v31 = vcombine.low %v1190_v40, %v1193_v39  ;;  %v1203_v42 = vrot.slane %v4425_v23, 5  ;;  %v4752_v12 = vcombine.low %v601_v33, %v611_v8 }
  0x64   : > { %v4749_v47 = vcombine.low %v1197_v30, %v1200_v38  ;;  %v1206_v19 = vrot.slane %v4432_v27, 5  ;;  %v1210_v0 = vrot.slane %v4474_v18, 5  ;;  %v3330_v35 = vrot.slane %v4466_v3, 9 }
  0x65   : > { %5893 = vst [vmem:[#allocation28_spill] sm:$0xff] %v4752_v12  ;;  %3875 = vmatprep.mubr.msk.bf16.mxu0 %vm662_vm3, %v3344_v31  ;;  %v1204_v10 = vsel %vm4703_vm7, %v3329_v21, %v1203_v42  ;;  %v1205_v28 = vrot.slane %v1203_v42, 4  ;;  %3836 = vmatmul.mubr.msk.bf16.gmra.mxu1 %vm662_vm3, %v4752_v12  ;;  %v3331_v40 = vrot.slane %v4521_v9, 9  ;;  %v1217_v23 = vrot.slane %v4526_v22, 5 }
  0x66   : > { %v5894_v27 = vcombine.low %v4344_v6, %v4347_v7  ;;  %v1212_v2 = vrot.slane %v1210_v0, 4  ;;  %v1213_v53 = vrot.slane %v4487_v29, 5  ;;  %v1220_v33 = vrot.slane %v4537_v46, 5  ;;  %v4787_v46 = vld [vmem:[%s5814_s1 + $0x18] sm:$0xf] }
  0x67   : > { %v1207_v50 = vsel %vm4703_vm7, %v1205_v28, %v1206_v19  ;;  %v1219_v56 = vrot.slane %v1217_v23, 4  ;;  %v1832_v30 = vsel %vm711_vm0, %v4447_v43, 0  ;;  %v1224_v1 = vrot.slane %v4569_v4, 5  ;;  %v4804_v19 = vld [vmem:[%s5814_s1 + $0x14] sm:$0xf] }
  0x68   : > { %3841 = vmatprep.mubr.msk.bf16.mxu1 %vm662_vm3, %v5894_v27  ;;  %v4772_v37 = vcombine.low %v1204_v10, %v1207_v50  ;;  %v1604_v6 = vsel %vm711_vm0, %v4482_v24, 0  ;;  %v1211_v7 = vsel %vm4703_vm7, %v3330_v35, %v1210_v0  ;;  %v1218_v39 = vsel %vm4703_vm7, %v3331_v40, %v1217_v23 }
  0x69   : > { %v1231_v29 = vrot.slane %v4615_v55, 5  ;;  %v1214_v43 = vsel %vm4703_vm7, %v1212_v2, %v1213_v53  ;;  %v1221_v24 = vsel %vm4703_vm7, %v1219_v56, %v1220_v33  ;;  %v3332_v54 = vrot.slane %v4564_v44, 9 }
  0x6a   : > { %3876 = vmatmul.mubr.msk.bf16.vlgmr.msra.gmra.mxu0 %vm662_vm3, %v4749_v47  ;;  %v1227_v38 = vrot.slane %v4581_v14, 5  ;;  %v1226_v21 = vrot.slane %v1224_v1, 4  ;;  %v3333_v8 = vrot.slane %v4604_v20, 9  ;;  %v1234_v42 = vrot.slane %v4623_v36, 5 }
  0x6b   : > { %3942 = vmatpush3.bf16.msra.mxu0 %v1832_v30  ;;  %3879 = vmatprep.mubr.msk.bf16.mxu0 %vm662_vm3, %v4772_v37  ;;  %v1233_v31 = vrot.slane %v1231_v29, 4  ;;  %v4812_v14 = vcombine.low %v1211_v7, %v1214_v43  ;;  %v4814_v10 = vcombine.low %v1218_v39, %v1221_v24  ;;  %v1225_v36 = vsel %vm4703_vm7, %v3332_v54, %v1224_v1 }
  0x6c   : > { %4120 = vmatprep.subr.msk.bf16.mxu0 %vm711_vm0, %v4787_v46  ;;  %v1228_v28 = vsel %vm4703_vm7, %v1226_v21, %v1227_v38  ;;  %v1232_v0 = vsel %vm4703_vm7, %v3333_v8, %v1231_v29  ;;  %v1238_v40 = vrot.slane %v4659_v62, 5  ;;  %v1248_v23 = vrot.slane %v4365_v17, 5  ;;  %v5895_v8 = vld [vmem:[#allocation19_spill] sm:$0xff] }
  0x6d   : > { %3842 = vmatmul.mubr.msk.bf16.vlgmr.msra.gmra.mxu1 %vm662_vm3, %v4715_v45  ;;  %v1235_v35 = vsel %vm4703_vm7, %v1233_v31, %v1234_v42  ;;  %v3334_v27 = vrot.slane %v4652_v51, 9  ;;  %v3335_v50 = vrot.slane %v4357_v13, 9  ;;  %v1245_v2 = vrot.slane %v4362_v16, 5  ;;  %v5896_v42 = vld [vmem:[#allocation23_spill] sm:$0xff] }
  0x6e   : > { %3908 = vmatpush3.bf16.msra.mxu1 %v1604_v6  ;;  %3845 = vmatprep.mubr.msk.bf16.mxu1 %vm662_vm3, %v4742_v63  ;;  %v4833_v53 = vcombine.low %v4466_v3, %v4474_v18  ;;  %v4837_v33 = vcombine.low %v4521_v9, %v4526_v22  ;;  %v4841_v56 = vcombine.low %v4564_v44, %v4569_v4  ;;  %v1241_v3 = vrot.slane %v4664_v48, 5 }
  0x6f   : > { %4119 = vmatprep.subr.msk.bf16.mxu1 %vm711_vm0, %v4804_v19  ;;  %v4845_v17 = vcombine.low %v4604_v20, %v4615_v55  ;;  %v4849_v30 = vcombine.low %v1225_v36, %v1228_v28  ;;  %v4851_v1 = vcombine.low %v1232_v0, %v1235_v35  ;;  %v4856_v18 = vcombine.low %v4495_v41, %v4502_v49  ;;  %v5897_v36 = vld [vmem:[#allocation21_spill] sm:$0xff] }
  0x70   : > { %v1240_v9 = vrot.slane %v1238_v40, 4  ;;  %v3338_v22 = vrot.slane %v4495_v41, 9  ;;  %v1266_v44 = vrot.slane %v4502_v49, 5  ;;  %v1269_v4 = vrot.slane %v4512_v57, 5 }
  0x71   : > { %v1239_v20 = vsel %vm4703_vm7, %v3334_v27, %v1238_v40  ;;  %v1246_v48 = vsel %vm4703_vm7, %v3335_v50, %v1245_v2  ;;  %v1247_v55 = vrot.slane %v1245_v2, 4  ;;  %v4869_v6 = vcombine.low %v4542_v52, %v4547_v61  ;;  %v5898_v40 = vld [vmem:[#allocation24_spill] sm:$0xff] }
  0x72   : > { %3880 = vmatmul.mubr.msk.bf16.gmra.mxu0 %vm662_vm3, %v4812_v14  ;;  %v1267_v41 = vsel %vm4703_vm7, %v3338_v22, %v1266_v44  ;;  %v1268_v49 = vrot.slane %v1266_v44, 4  ;;  %v3339_v57 = vrot.slane %v4542_v52, 9  ;;  %v1273_v7 = vrot.slane %v4547_v61, 5 }
  0x73   : > { %3883 = vmatprep.mubr.msk.bf16.mxu0 %vm662_vm3, %v4814_v10  ;;  %v1252_v39 = vrot.slane %v4402_v59, 5  ;;  %v1276_v29 = vrot.slane %v4559_v34, 5  ;;  %v4883_v43 = vcombine.low %v4586_v26, %v4593_v25  ;;  %v3340_v24 = vrot.slane %v4586_v26, 9 }
  0x74   : > { %v1242_v54 = vsel %vm4703_vm7, %v1240_v9, %v1241_v3  ;;  %v1270_v52 = vsel %vm4703_vm7, %v1268_v49, %v1269_v4  ;;  %v1274_v61 = vsel %vm4703_vm7, %v3339_v57, %v1273_v7  ;;  %v1275_v38 = vrot.slane %v1273_v7, 4  ;;  %v5899_v3 = vld [vmem:[#allocation26_spill] sm:$0xff]  ;;  %v5900_v57 = vld [vmem:[#allocation11_spill] sm:$0xff] }
  0x75   : > { %3846 = vmatmul.mubr.msk.bf16.gmra.mxu1 %vm662_vm3, %v4833_v53  ;;  %v4892_v21 = vcombine.low %v1267_v41, %v1270_v52  ;;  %v1280_v34 = vrot.slane %v4593_v25, 5  ;;  %v1283_v31 = vrot.slane %v5895_v8, 5  ;;  %v4898_v28 = vcombine.low %v5897_v36, %v5896_v42 }
  0x76   : > { %3849 = vmatprep.mubr.msk.bf16.mxu1 %vm662_vm3, %v4837_v33  ;;  %v1277_v26 = vsel %vm4703_vm7, %v1275_v38, %v1276_v29  ;;  %v3341_v0 = vrot.slane %v5897_v36, 9  ;;  %v1287_v35 = vrot.slane %v5896_v42, 5  ;;  %v1290_v27 = vrot.slane %v5898_v40, 5  ;;  %v5902_v42 = vld [vmem:[#allocation7_spill] sm:$0xff] }
  0x77   : > { %v4907_v50 = vcombine.low %v1274_v61, %v1277_v26  ;;  %v1281_v25 = vsel %vm4703_vm7, %v3340_v24, %v1280_v34  ;;  %v1282_v2 = vrot.slane %v1280_v34, 4  ;;  %v4913_v9 = vcombine.low %v5899_v3, %v4681_v11 }
  0x78   : > { %v1288_v22 = vsel %vm4703_vm7, %v3341_v0, %v1287_v35  ;;  %v1289_v44 = vrot.slane %v1287_v35, 4  ;;  %v3342_v4 = vrot.slane %v5899_v3, 9  ;;  %v1294_v41 = vrot.slane %v4681_v11, 5  ;;  %v5903_v0 = vld [vmem:[#allocation9_spill] sm:$0xff] }
  0x79   : > { %v1249_v49 = vsel %vm4703_vm7, %v1247_v55, %v1248_v23  ;;  %v1259_v7 = vrot.slane %v5900_v57, 5  ;;  %v1284_v29 = vsel %vm4703_vm7, %v1282_v2, %v1283_v31  ;;  %v1297_v24 = vrot.slane %v4692_v58, 5  ;;  %v5901_v55 = vld [vmem:[#allocation6_spill] sm:$0xff] }
  0x7a   : > { %3884 = vmatmul.mubr.msk.bf16.gmra.mxu0 %vm662_vm3, %v4849_v30  ;;  %v4929_v52 = vcombine.low %v1281_v25, %v1284_v29  ;;  %v1291_v61 = vsel %vm4703_vm7, %v1289_v44, %v1290_v27  ;;  %v1295_v11 = vsel %vm4703_vm7, %v3342_v4, %v1294_v41  ;;  %v1296_v38 = vrot.slane %v1294_v41, 4  ;;  %v5904_v27 = vld [vmem:[#allocation12_spill] sm:$0xff]  ;;  %v5016_v4 = vld [vmem:[%s4335_s7 + $0xc0] sm:$0xf]  ;;  %v220_v41 = vld [vmem:[%s4335_s7 + $0xc8] sm:$0x1] }
  0x7b   : > { %3887 = vmatprep.mubr.msk.bf16.mxu0 %vm662_vm3, %v4851_v1  ;;  %v4937_v23 = vcombine.low %v1239_v20, %v1242_v54  ;;  %v3336_v34 = vrot.slane %v5901_v55, 9  ;;  %v4940_v58 = vcombine.low %v1288_v22, %v1291_v61  ;;  %v4942_v8 = vcombine.low %v1246_v48, %v1249_v49  ;;  %v5905_v61 = vld [vmem:[#allocation10_spill] sm:$0xff] }
  0x7c   : > { %v1254_v31 = vrot.slane %v1252_v39, 4  ;;  %v1255_v36 = vrot.slane %v5902_v42, 5  ;;  %v1298_v26 = vsel %vm4703_vm7, %v1296_v38, %v1297_v24  ;;  %v3337_v35 = vrot.slane %v5903_v0, 9  ;;  %v5907_v42 = vld [vmem:[#allocation16_spill] sm:$0xff] }
  0x7d   : > { %3850 = vmatmul.mubr.msk.bf16.gmra.mxu1 %vm662_vm3, %v4841_v56  ;;  %v1261_v40 = vrot.slane %v1259_v7, 4  ;;  %v1262_v25 = vrot.slane %v5904_v27, 5  ;;  %v4949_v2 = vcombine.low %v1295_v11, %v1298_v26  ;;  %v4953_v20 = vcombine.low %v4652_v51, %v4659_v62  ;;  %v5911_v26 = vld [vmem:[#allocation8_spill] sm:$0xff] }
  0x7e   : > { %3853 = vmatprep.mubr.msk.bf16.mxu1 %vm662_vm3, %v4845_v17  ;;  %v4959_v48 = vcombine.low %v4357_v13, %v4362_v16  ;;  %v1253_v54 = vsel %vm4703_vm7, %v3336_v34, %v1252_v39  ;;  %v1256_v3 = vsel %vm4703_vm7, %v1254_v31, %v1255_v36  ;;  %v1260_v51 = vsel %vm4703_vm7, %v3337_v35, %v1259_v7  ;;  %v5906_v34 = vld [vmem:[#allocation14_spill] sm:$0xff]  ;;  %v5910_v36 = vld [vmem:[#allocation27_spill] sm:$0xff] }
  0x7f   : > { %v1263_v62 = vsel %vm4703_vm7, %v1261_v40, %v1262_v25  ;;  %v4975_v13 = vcombine.low %v1253_v54, %v1256_v3  ;;  %v4981_v39 = vcombine.low %v5901_v55, %v4402_v59  ;;  %v4987_v22 = vcombine.low %v5903_v0, %v5900_v57  ;;  %v5010_v59 = vld [vmem:[%s4335_s7 + $0xc4] sm:$0xf]  ;;  %v3468_v55 = vld [vmem:[%s5814_s1 + $0x20] sm:$0xf]  ;;  %v5913_v35 = vld [vmem:[#allocation15_spill] sm:$0xff] }
  0x80   : > { %v4977_v16 = vcombine.low %v1260_v51, %v1263_v62  ;;  %v2030_v44 = vrot.slane %v5010_v59, 5  ;;  %v3412_v49 = vrot.slane %v5016_v4, 9  ;;  %v2033_v7 = vrot.slane %v220_v41, 5  ;;  %v5912_v0 = vld [vmem:[#allocation13_spill] sm:$0xff] }
  0x81   : > { %v2250_v38 = vsel %vm711_vm0, %v4787_v46, 0  ;;  %v2044_v31 = vsel %vm711_vm0, %v4804_v19, 0  ;;  %v5908_v46 = vld [vmem:[#allocation18_spill] sm:$0xff]  ;;  %v5914_v40 = vld [vmem:[#allocation17_spill] sm:$0xff]  ;;  %v1800_v27 = vshrl.u32 %v5016_v4, 16  ;;  %v1803_v25 = vshll.u32 %v5016_v4, 16 }
  0x82   : > { %3888 = vmatmul.mubr.msk.bf16.gmra.mxu0 %vm662_vm3, %v4937_v23  ;;  %v2032_v57 = vrot.slane %v2030_v44, 4  ;;  %v2031_v29 = vsel %vm4703_vm7, %v3412_v49, %v2030_v44  ;;  %v5909_v19 = vld [vmem:[#allocation22_spill] sm:$0xff]  ;;  %v1813_v54 = vshrl.u32 %v5010_v59, 16  ;;  %v1809_v3 = vshll.u32 %v5010_v59, 16 }
  0x83   : > { %3891 = vmatprep.mubr.msk.bf16.mxu0 %vm662_vm3, %v4942_v8  ;;  %v1802_v51 = vrot.slane %v1800_v27, 4  ;;  %v1805_v62 = vrot.slane %v1803_v25, 5 }
  0x84   : > { %v2034_v24 = vsel %vm4703_vm7, %v2032_v57, %v2033_v7  ;;  %v1811_v44 = vrot.slane %v1809_v3, 5  ;;  %v1815_v49 = vrot.slane %v1813_v54, 4  ;;  %v5915_v57 = vld [vmem:[#allocation20_spill] sm:$0xff]  ;;  %v5916_v7 = vld [vmem:[#allocation25_spill] sm:$0xff]  ;;  %v3377_v3 = vcombine.low %v5016_v4, %v5010_v59 }
  0x85   : > { %3854 = vmatmul.mubr.msk.bf16.gmra.mxu1 %vm662_vm3, %v4953_v20  ;;  %v5028_v11 = vcombine.low %v2031_v29, %v2034_v24  ;;  %v1806_v29 = vor.u32 %v1805_v62, %v1802_v51  ;;  %v2690_v51 = vsel %vm711_vm0, %v3468_v55, 0 }
  0x86   : > { %3857 = vmatprep.mubr.msk.bf16.mxu1 %vm662_vm3, %v4959_v48  ;;  %v1816_v24 = vor.u32 %v1815_v49, %v1811_v44 }
  0x8a   : > { %3892 = vmatmul.mubr.msk.bf16.gmra.mxu0 %vm662_vm3, %v4975_v13 }
  0x8b   : > { %3895 = vmatprep.mubr.msk.bf16.mxu0 %vm662_vm3, %v4977_v16 }
  0x8d   : > { %3858 = vmatmul.mubr.msk.bf16.gmra.mxu1 %vm662_vm3, %v4981_v39 }
  0x8e   : > { %3861 = vmatprep.mubr.msk.bf16.mxu1 %vm662_vm3, %v4987_v22 }
  0x92   : > { %3896 = vmatmul.mubr.msk.bf16.gmra.mxu0 %vm662_vm3, %v4892_v21 }
  0x93   : > { %3899 = vmatprep.mubr.msk.bf16.mxu0 %vm662_vm3, %v4907_v50 }
  0x95   : > { %3862 = vmatmul.mubr.msk.bf16.gmra.mxu1 %vm662_vm3, %v4856_v18 }
  0x96   : > { %3865 = vmatprep.mubr.msk.bf16.mxu1 %vm662_vm3, %v4869_v6 }
  0x9a   : > { %3900 = vmatmul.mubr.msk.bf16.gmra.mxu0 %vm662_vm3, %v4929_v52 }
  0x9b   : > { %3903 = vmatprep.mubr.msk.bf16.mxu0 %vm662_vm3, %v4940_v58 }
  0x9d   : > { %3866 = vmatmul.mubr.msk.bf16.gmra.mxu1 %vm662_vm3, %v4883_v43 }
  0x9e   : > { %3869 = vmatprep.mubr.msk.bf16.mxu1 %vm662_vm3, %v4898_v28 }
  0xa2   : > { %3904 = vmatmul.mubr.msk.bf16.gmra.mxu0 %vm662_vm3, %v4949_v2 }
  0xa3   : > { %3943 = vmatprep.mubr.msk.bf16.mxu0 %vm662_vm3, %v5905_v61  ;;  %v1819_v61 = vshll.u32 %v220_v41, 16 }
  0xa5   : > { %3870 = vmatmul.mubr.msk.bf16.gmra.mxu1 %vm662_vm3, %v4913_v9  ;;  %v1821_v27 = vrot.slane %v1819_v61, 5  ;;  %v5220_v61 = vld [vmem:[%s4335_s7 + $0xd0] sm:$0xf] }
  0xa6   : > { %3909 = vmatprep.mubr.msk.bf16.mxu1 %vm662_vm3, %v4715_v45  ;;  %v3449_v45 = vld [vmem:[%s5814_s1 + $0x1c] sm:$0xf] }
  0xa7   : > { %v2478_v62 = vsel %vm711_vm0, %v3449_v45, 0 }
  0xaa   : > { %3944 = vmatmul.mubr.msk.bf16.vlgmr.msra.gmra.mxu0 %vm662_vm3, %v5906_v34 }
  0xab   : > { %4010 = vmatpush3.bf16.msra.mxu0 %v2250_v38  ;;  %3947 = vmatprep.mubr.msk.bf16.mxu0 %vm662_vm3, %v5907_v42  ;;  %v1807_v38 = vrot.slane %v1806_v29, 4 }
  0xac   : > { %4122 = vmatprep.subr.msk.bf16.mxu0 %vm711_vm0, %v3468_v55 }
  0xad   : > { %3910 = vmatmul.mubr.msk.bf16.vlgmr.msra.gmra.mxu1 %vm662_vm3, %v4742_v63  ;;  %v1812_v25 = vsel %vm4380_vm4, %v1807_v38, %v1811_v44 }
  0xae   : > { %3976 = vmatpush3.bf16.msra.mxu1 %v2044_v31  ;;  %3913 = vmatprep.mubr.msk.bf16.mxu1 %vm662_vm3, %v4833_v53  ;;  %v1817_v31 = vrot.slane %v1816_v24, 4 }
  0xaf   : > { %4121 = vmatprep.subr.msk.bf16.mxu1 %vm711_vm0, %v3449_v45 }
  0xb0   : > { %v1822_v41 = vsel %vm4380_vm4, %v1817_v31, %v1821_v27 }
  0xb1   : > { %v5110_v54 = vcombine.low %v1812_v25, %v1822_v41 }
  0xb2   : > { %3948 = vmatmul.mubr.msk.bf16.gmra.mxu0 %vm662_vm3, %v5908_v46 }
  0xb3   : > { %3951 = vmatprep.mubr.msk.bf16.mxu0 %vm662_vm3, %v5909_v19  ;;  %5917 = vst [vmem:[#allocation19_spill] sm:$0xff] %v5110_v54 }
  0xb5   : > { %3914 = vmatmul.mubr.msk.bf16.gmra.mxu1 %vm662_vm3, %v4837_v33 }
  0xb6   : > { %3917 = vmatprep.mubr.msk.bf16.mxu1 %vm662_vm3, %v4841_v56 }
  0xba   : > { %3952 = vmatmul.mubr.msk.bf16.gmra.mxu0 %vm662_vm3, %v5910_v36 }
  0xbb   : > { %3955 = vmatprep.mubr.msk.bf16.mxu0 %vm662_vm3, %v4724_v15 }
  0xbd   : > { %3918 = vmatmul.mubr.msk.bf16.gmra.mxu1 %vm662_vm3, %v4845_v17 }
  0xbe   : > { %3921 = vmatprep.mubr.msk.bf16.mxu1 %vm662_vm3, %v4953_v20 }
  0xc2   : > { %3956 = vmatmul.mubr.msk.bf16.gmra.mxu0 %vm662_vm3, %v5911_v26 }
  0xc3   : > { %3959 = vmatprep.mubr.msk.bf16.mxu0 %vm662_vm3, %v5912_v0 }
  0xc5   : > { %3922 = vmatmul.mubr.msk.bf16.gmra.mxu1 %vm662_vm3, %v4959_v48 }
  0xc6   : > { %3925 = vmatprep.mubr.msk.bf16.mxu1 %vm662_vm3, %v4981_v39 }
  0xca   : > { %3960 = vmatmul.mubr.msk.bf16.gmra.mxu0 %vm662_vm3, %v5913_v35 }
  0xcb   : > { %3963 = vmatprep.mubr.msk.bf16.mxu0 %vm662_vm3, %v5914_v40 }
  0xcd   : > { %3926 = vmatmul.mubr.msk.bf16.gmra.mxu1 %vm662_vm3, %v4987_v22 }
  0xce   : > { %3929 = vmatprep.mubr.msk.bf16.mxu1 %vm662_vm3, %v4856_v18 }
  0xd2   : > { %3964 = vmatmul.mubr.msk.bf16.gmra.mxu0 %vm662_vm3, %v5915_v57 }
  0xd3   : > { %3967 = vmatprep.mubr.msk.bf16.mxu0 %vm662_vm3, %v5916_v7 }
  0xd5   : > { %3930 = vmatmul.mubr.msk.bf16.gmra.mxu1 %vm662_vm3, %v4869_v6 }
  0xd6   : > { %3933 = vmatprep.mubr.msk.bf16.mxu1 %vm662_vm3, %v4883_v43 }
  0xda   : > { %3968 = vmatmul.mubr.msk.bf16.gmra.mxu0 %vm662_vm3, %v4698_v5 }
  0xdb   : > { %3971 = vmatprep.mubr.msk.bf16.mxu0 %vm662_vm3, %v4752_v12 }
  0xdd   : > { %3934 = vmatmul.mubr.msk.bf16.gmra.mxu1 %vm662_vm3, %v4898_v28 }
  0xde   : > { %3937 = vmatprep.mubr.msk.bf16.mxu1 %vm662_vm3, %v4913_v9 }
  0xe2   : > { %3972 = vmatmul.mubr.msk.bf16.gmra.mxu0 %vm662_vm3, %v5110_v54 }
  0xe3   : > { %4011 = vmatprep.mubr.msk.bf16.mxu0 %vm662_vm3, %v4742_v63 }
  0xe5   : > { %3938 = vmatmul.mubr.msk.bf16.gmra.mxu1 %vm662_vm3, %v3377_v3 }
  0xe6   : > { %3977 = vmatprep.mubr.msk.bf16.mxu1 %vm662_vm3, %v4749_v47 }
  0xea   : > { %4012 = vmatmul.mubr.msk.bf16.vlgmr.msra.gmra.mxu0 %vm662_vm3, %v4833_v53 }
  0xeb   : > { %4078 = vmatpush3.bf16.msra.mxu0 %v2690_v51  ;;  %4015 = vmatprep.mubr.msk.bf16.mxu0 %vm662_vm3, %v4837_v33 }
  0xed   : > { %3978 = vmatmul.mubr.msk.bf16.vlgmr.msra.gmra.mxu1 %vm662_vm3, %v4772_v37 }
  0xee   : > { %4044 = vmatpush3.bf16.msra.mxu1 %v2478_v62  ;;  %3981 = vmatprep.mubr.msk.bf16.mxu1 %vm662_vm3, %v4812_v14  ;;  %v5133_v63 = vpop.f32.mrf.mxu0 }
  0xf0   : > { %v5143_v53 = vpop.f32.mrf.mxu0 }
  0xf2   : > { %4016 = vmatmul.mubr.msk.bf16.gmra.mxu0 %vm662_vm3, %v4841_v56  ;;  %v5149_v56 = vpop.f32.mrf.mxu0 }
  0xf3   : > { %4019 = vmatprep.mubr.msk.bf16.mxu0 %vm662_vm3, %v4845_v17  ;;  %v5139_v47 = vpop.f32.mrf.mxu1 }
  0xf4   : > { %v5159_v59 = vpop.f32.mrf.mxu0 }
  0xf5   : > { %3982 = vmatmul.mubr.msk.bf16.gmra.mxu1 %vm662_vm3, %v4814_v10  ;;  %v5145_v33 = vpop.f32.mrf.mxu1 }
  0xf6   : > { %3985 = vmatprep.mubr.msk.bf16.mxu1 %vm662_vm3, %v4849_v30 }
  0xf7   : > { %v5155_v17 = vpop.f32.mrf.mxu1 }
  0xf9   : > { %v5161_v4 = vpop.f32.mrf.mxu1 }
  0xfa   : > { %4020 = vmatmul.mubr.msk.bf16.gmra.mxu0 %vm662_vm3, %v4953_v20 }
  0xfb   : > { %4023 = vmatprep.mubr.msk.bf16.mxu0 %vm662_vm3, %v4959_v48 }
  0xfd   : > { %3986 = vmatmul.mubr.msk.bf16.gmra.mxu1 %vm662_vm3, %v4851_v1 }
  0xfe   : > { %3989 = vmatprep.mubr.msk.bf16.mxu1 %vm662_vm3, %v4937_v23 }
  0xff   : > { %v5165_v20 = vpop.f32.mrf.mxu0 }
 0x101   : > { %v5175_v55 = vpop.f32.mrf.mxu0 }
 0x102   : > { %4024 = vmatmul.mubr.msk.bf16.gmra.mxu0 %vm662_vm3, %v4981_v39 }
 0x103   : > { %4027 = vmatprep.mubr.msk.bf16.mxu0 %vm662_vm3, %v4987_v22  ;;  %v5171_v48 = vpop.f32.mrf.mxu1  ;;  %v5181_v39 = vpop.f32.mrf.mxu0 }
 0x105   : > { %3990 = vmatmul.mubr.msk.bf16.gmra.mxu1 %vm662_vm3, %v4942_v8  ;;  %v5177_v45 = vpop.f32.mrf.mxu1  ;;  %v5191_v44 = vpop.f32.mrf.mxu0 }
 0x106   : > { %3993 = vmatprep.mubr.msk.bf16.mxu1 %vm662_vm3, %v4975_v13 }
 0x107   : > { %v5187_v22 = vpop.f32.mrf.mxu1 }
 0x109   : > { %v5193_v49 = vpop.f32.mrf.mxu1 }
 0x10a   : > { %4028 = vmatmul.mubr.msk.bf16.gmra.mxu0 %vm662_vm3, %v4856_v18 }
 0x10b   : > { %4031 = vmatprep.mubr.msk.bf16.mxu0 %vm662_vm3, %v4869_v6 }
 0x10d   : > { %3994 = vmatmul.mubr.msk.bf16.gmra.mxu1 %vm662_vm3, %v4977_v16 }
 0x10e   : > { %3997 = vmatprep.mubr.msk.bf16.mxu1 %vm662_vm3, %v4892_v21 }
 0x110   : > { %v5197_v18 = vpop.f32.mrf.mxu0 }
 0x112   : > { %4032 = vmatmul.mubr.msk.bf16.gmra.mxu0 %vm662_vm3, %v4883_v43  ;;  %v5207_v29 = vpop.f32.mrf.mxu0 }
 0x113   : > { %4035 = vmatprep.mubr.msk.bf16.mxu0 %vm662_vm3, %v4898_v28  ;;  %v5217_v28 = vld [vmem:[%s4335_s7 + $0xcc] sm:$0xf] }
 0x114   : > { %v5213_v43 = vpop.f32.mrf.mxu0 }
 0x115   : > { %3998 = vmatmul.mubr.msk.bf16.gmra.mxu1 %vm662_vm3, %v4907_v50  ;;  %v5203_v6 = vpop.f32.mrf.mxu1 }
 0x116   : > { %5918 = vst [vmem:[#allocation23_spill] sm:$0xff] %v5203_v6  ;;  %4001 = vmatprep.mubr.msk.bf16.mxu1 %vm662_vm3, %v4929_v52  ;;  %v5226_v31 = vpop.f32.mrf.mxu0 }
 0x117   : > { %v5209_v24 = vpop.f32.mrf.mxu1 }
 0x118   : > { %5919 = vst [vmem:[#allocation21_spill] sm:$0xff] %v5209_v24 }
 0x119   : > { %v5224_v38 = vpop.f32.mrf.mxu1 }
 0x11a   : > { %4036 = vmatmul.mubr.msk.bf16.gmra.mxu0 %vm662_vm3, %v4913_v9  ;;  %5920 = vst [vmem:[#allocation24_spill] sm:$0xff] %v5224_v38  ;;  %v3432_v9 = vcombine.low %v5217_v28, %v5220_v61 }
 0x11b   : > { %4039 = vmatprep.mubr.msk.bf16.mxu0 %vm662_vm3, %v3377_v3  ;;  %v5232_v27 = vpop.f32.mrf.mxu1 }
 0x11c   : > { %5921 = vst [vmem:[#allocation26_spill] sm:$0xff] %v5232_v27 }
 0x11d   : > { %4002 = vmatmul.mubr.msk.bf16.gmra.mxu1 %vm662_vm3, %v4940_v58 }
 0x11e   : > { %4005 = vmatprep.mubr.msk.bf16.mxu1 %vm662_vm3, %v4949_v2 }
 0x122   : > { %v5234_v25 = vpop.f32.mrf.mxu0  ;;  %4040 = vmatmul.mubr.msk.bf16.gmra.mxu0 %vm662_vm3, %v3432_v9 }
 0x123   : > { %4079 = vmatprep.mubr.msk.bf16.mxu0 %vm662_vm3, %v4772_v37 }
 0x124   : > { %v5239_v41 = vpop.f32.mrf.mxu0 }
 0x125   : > { %v5241_v3 = vpop.f32.mrf.mxu1  ;;  %4006 = vmatmul.mubr.msk.bf16.gmra.mxu1 %vm662_vm3, %v5028_v11 }
 0x126   : > { %5922 = vst [vmem:[#allocation11_spill] sm:$0xff] %v5241_v3  ;;  %v5245_v51 = vpop.f32.mrf.mxu0  ;;  %4045 = vmatprep.mubr.msk.bf16.mxu1 %vm662_vm3, %v5906_v34 }
 0x127   : > { %v5249_v62 = vpop.f32.mrf.mxu1 }
 0x128   : > { %5923 = vst [vmem:[#allocation6_spill] sm:$0xff] %v5249_v62  ;;  %v5251_v27 = vpop.f32.mrf.mxu0 }
 0x129   : > { %v5253_v9 = vpop.f32.mrf.mxu1 }
 0x12a   : > { %5924 = vst [vmem:[#allocation7_spill] sm:$0xff] %v5253_v9  ;;  %v3877_v38 = vpop.f32.mrf.mxu0  ;;  %4080 = vmatmul.mubr.msk.bf16.vlgmr.msra.gmra.mxu0 %vm662_vm3, %v4812_v14 }
 0x12b   : > { %v5257_v37 = vpop.f32.mrf.mxu1  ;;  %4083 = vmatprep.mubr.msk.bf16.mxu0 %vm662_vm3, %v4814_v10 }
 0x12c   : > { %5925 = vst [vmem:[#allocation9_spill] sm:$0xff] %v5257_v37  ;;  %v1434_v3 = vpop.f32.mrf.mxu0 }
 0x12d   : > { %v3843_v24 = vpop.f32.mrf.mxu1  ;;  %4046 = vmatmul.mubr.msk.bf16.vlgmr.msra.gmra.mxu1 %vm662_vm3, %v5907_v42 }
 0x12e   : > { %v1050_v34 = vadd.f32 %v3843_v24, %v5133_v63  ;;  %v3878_v62 = vpop.f32.mrf.mxu0  ;;  %4049 = vmatprep.mubr.msk.bf16.mxu1 %vm662_vm3, %v5908_v46 }
 0x12f   : > { %v1041_v9 = vpop.f32.mrf.mxu1 }
 0x130   : > { %v5266_v54 = vadd.f32 %v3877_v38, %v1050_v34  ;;  %v1042_v14 = vadd.f32 %v1041_v9, %v5143_v53  ;;  %v1437_v37 = vpop.f32.mrf.mxu0 }
 0x131   : > { %v3844_v6 = vpop.f32.mrf.mxu1 }
 0x132   : > { %v5269_v32 = vadd.f32 %v1434_v3, %v1042_v14  ;;  %v1053_v10 = vadd.f32 %v3844_v6, %v5149_v56  ;;  %v3881_v12 = vpop.f32.mrf.mxu0  ;;  %4084 = vmatmul.mubr.msk.bf16.gmra.mxu0 %vm662_vm3, %v4849_v30 }
 0x133   : > { %v1044_v42 = vpop.f32.mrf.mxu1  ;;  %4087 = vmatprep.mubr.msk.bf16.mxu0 %vm662_vm3, %v4851_v1 }
 0x134   : > { %v5276_v46 = vadd.f32 %v3878_v62, %v1053_v10  ;;  %v1045_v63 = vadd.f32 %v1044_v42, %v5159_v59  ;;  %v1450_v24 = vpop.f32.mrf.mxu0 }
 0x135   : > { %v3847_v53 = vpop.f32.mrf.mxu1  ;;  %4050 = vmatmul.mubr.msk.bf16.gmra.mxu1 %vm662_vm3, %v5909_v19 }
 0x136   : > { %v5281_v38 = vadd.f32 %v1437_v37, %v1045_v63  ;;  %v1066_v56 = vadd.f32 %v3847_v53, %v5165_v20  ;;  %v3882_v6 = vpop.f32.mrf.mxu0  ;;  %4053 = vmatprep.mubr.msk.bf16.mxu1 %vm662_vm3, %v5910_v36 }
 0x137   : > { %v1057_v30 = vpop.f32.mrf.mxu1 }
 0x138   : > { %v5286_v3 = vadd.f32 %v3881_v12, %v1066_v56  ;;  %v1058_v1 = vadd.f32 %v1057_v30, %v5175_v55  ;;  %v1453_v62 = vpop.f32.mrf.mxu0 }
 0x139   : > { %v3848_v59 = vpop.f32.mrf.mxu1 }
 0x13a   : > { %v5289_v9 = vadd.f32 %v1450_v24, %v1058_v1  ;;  %v1069_v34 = vadd.f32 %v3848_v59, %v5181_v39  ;;  %v3885_v19 = vpop.f32.mrf.mxu0  ;;  %4088 = vmatmul.mubr.msk.bf16.gmra.mxu0 %vm662_vm3, %v4937_v23 }
 0x13b   : > { %v1060_v20 = vpop.f32.mrf.mxu1  ;;  %4091 = vmatprep.mubr.msk.bf16.mxu0 %vm662_vm3, %v4942_v8 }
 0x13c   : > { %v5296_v36 = vadd.f32 %v3882_v6, %v1069_v34  ;;  %v1061_v12 = vadd.f32 %v1060_v20, %v5191_v44  ;;  %v1466_v37 = vpop.f32.mrf.mxu0 }
 0x13d   : > { %v3851_v55 = vpop.f32.mrf.mxu1  ;;  %4054 = vmatmul.mubr.msk.bf16.gmra.mxu1 %vm662_vm3, %v4724_v15 }
 0x13e   : > { %v5301_v14 = vadd.f32 %v1453_v62, %v1061_v12  ;;  %v1082_v39 = vadd.f32 %v3851_v55, %v5197_v18  ;;  %v3886_v10 = vpop.f32.mrf.mxu0  ;;  %4057 = vmatprep.mubr.msk.bf16.mxu1 %vm662_vm3, %v5911_v26 }
 0x13f   : > { %v1073_v23 = vpop.f32.mrf.mxu1 }
 0x140   : > { %v5306_v42 = vadd.f32 %v3885_v19, %v1082_v39  ;;  %v1074_v8 = vadd.f32 %v1073_v23, %v5207_v29  ;;  %v1469_v63 = vpop.f32.mrf.mxu0 }
 0x141   : > { %v3852_v44 = vpop.f32.mrf.mxu1 }
 0x142   : > { %v5309_v24 = vadd.f32 %v1466_v37, %v1074_v8  ;;  %v1085_v53 = vadd.f32 %v3852_v44, %v5213_v43  ;;  %v3889_v15 = vpop.f32.mrf.mxu0  ;;  %4092 = vmatmul.mubr.msk.bf16.gmra.mxu0 %vm662_vm3, %v4975_v13  ;;  %v2449_v37 = vshll.u32 %v5217_v28, 16 }
 0x143   : > { %v1076_v18 = vpop.f32.mrf.mxu1  ;;  %4095 = vmatprep.mubr.msk.bf16.mxu0 %vm662_vm3, %v4977_v16 }
 0x144   : > { %v5316_v26 = vadd.f32 %v3886_v10, %v1085_v53  ;;  %v1077_v56 = vadd.f32 %v1076_v18, %v5226_v31  ;;  %v1482_v6 = vpop.f32.mrf.mxu0  ;;  %v2451_v44 = vrot.slane %v2449_v37, 5 }
 0x145   : > { %v3855_v29 = vpop.f32.mrf.mxu1  ;;  %4058 = vmatmul.mubr.msk.bf16.gmra.mxu1 %vm662_vm3, %v5912_v0 }
 0x146   : > { %v5321_v30 = vadd.f32 %v1469_v63, %v1077_v56  ;;  %v1098_v43 = vadd.f32 %v3855_v29, %v5234_v25  ;;  %v3890_v1 = vpop.f32.mrf.mxu0  ;;  %4061 = vmatprep.mubr.msk.bf16.mxu1 %vm662_vm3, %v5913_v35 }
 0x147   : > { %v1089_v13 = vpop.f32.mrf.mxu1 }
 0x148   : > { %v5326_v62 = vadd.f32 %v3889_v15, %v1098_v43  ;;  %v1090_v16 = vadd.f32 %v1089_v13, %v5239_v41  ;;  %v1485_v59 = vpop.f32.mrf.mxu0  ;;  %v2446_v41 = vshrl.u32 %v5217_v28, 16 }
 0x149   : > { %v3856_v31 = vpop.f32.mrf.mxu1 }
 0x14a   : > { %v5329_v34 = vadd.f32 %v1482_v6, %v1090_v16  ;;  %v1101_v19 = vadd.f32 %v3856_v31, %v5245_v51  ;;  %v3893_v0 = vpop.f32.mrf.mxu0  ;;  %4096 = vmatmul.mubr.msk.bf16.gmra.mxu0 %vm662_vm3, %v4892_v21  ;;  %v2455_v51 = vshll.u32 %v5220_v61, 16  ;;  %v2459_v21 = vshrl.u32 %v5220_v61, 16 }
 0x14b   : > { %v1092_v25 = vpop.f32.mrf.mxu1  ;;  %4099 = vmatprep.mubr.msk.bf16.mxu0 %vm662_vm3, %v4907_v50 }
 0x14c   : > { %v5336_v35 = vadd.f32 %v3890_v1, %v1101_v19  ;;  %v1093_v20 = vadd.f32 %v1092_v25, %v5251_v27  ;;  %v1498_v12 = vpop.f32.mrf.mxu0  ;;  %v2457_v15 = vrot.slane %v2455_v51, 5  ;;  %v2461_v18 = vrot.slane %v2459_v21, 4 }
 0x14d   : > { %v3859_v55 = vpop.f32.mrf.mxu1  ;;  %4062 = vmatmul.mubr.msk.bf16.gmra.mxu1 %vm662_vm3, %v5914_v40  ;;  %v2448_v40 = vrot.slane %v2446_v41, 4  ;;  %v3467_v19 = vrot.slane %v5217_v28, 9 }
 0x14e   : > { %v5345_v39 = vadd.f32 %v1485_v59, %v1093_v20  ;;  %v1114_v50 = vadd.f32 %v3859_v55, %v5139_v47  ;;  %v3894_v10 = vpop.f32.mrf.mxu0  ;;  %4065 = vmatprep.mubr.msk.bf16.mxu1 %vm662_vm3, %v5915_v57  ;;  %v2676_v57 = vrot.slane %v5220_v61, 5 }
 0x14f   : > { %v1105_v27 = vpop.f32.mrf.mxu1 }
 0x150   : > { %v5350_v23 = vadd.f32 %v3893_v0, %v1114_v50  ;;  %v1106_v8 = vadd.f32 %v1105_v27, %v5145_v33  ;;  %v1501_v63 = vpop.f32.mrf.mxu0  ;;  %v223_v33 = vld [vmem:[%s4335_s7 + $0xd4] sm:$0x1]  ;;  %s3556_s7 = sshll.u32 %s4289_s16, 11  ;;  %s5773_s16 = scalar_lea.sflag [#allocation3], %s161_s4 }
 0x151   : > { %v3860_v53 = vpop.f32.mrf.mxu1  ;;  %v2465_v31 = vshll.u32 %v223_v33, 16  ;;  %v2679_v25 = vrot.slane %v223_v33, 5  ;;  %s5766_s11 = scalar_lea.hbm %s5816_s3, %s3556_s7 }
 0x152   : > { %v5353_v56 = vadd.f32 %v1498_v12, %v1106_v8  ;;  %v1117_v47 = vadd.f32 %v3860_v53, %v5155_v17  ;;  %v3897_v6 = vpop.f32.mrf.mxu0  ;;  %4100 = vmatmul.mubr.msk.bf16.gmra.mxu0 %vm662_vm3, %v4929_v52  ;;  %v2452_v17 = vor.u32 %v2451_v44, %v2448_v40 }
 0x153   : > { %v1108_v29 = vpop.f32.mrf.mxu1  ;;  %4103 = vmatprep.mubr.msk.bf16.mxu0 %vm662_vm3, %v4940_v58  ;;  %v2462_v58 = vor.u32 %v2461_v18, %v2457_v15  ;;  %v2467_v28 = vrot.slane %v2465_v31, 5 }
 0x154   : > { %v5362_v43 = vadd.f32 %v3894_v10, %v1117_v47  ;;  %v1109_v1 = vadd.f32 %v1108_v29, %v5161_v4  ;;  %v1514_v13 = vpop.f32.mrf.mxu0  ;;  %v2678_v4 = vrot.slane %v2676_v57, 4  ;;  %v2453_v37 = vrot.slane %v2452_v17, 4  ;;  %v5929_v47 = vld [vmem:[#allocation19_spill] sm:$0xff]  ;;  %v5930_v29 = vld [vmem:[#allocation21_spill] sm:$0xff]  ;;  %v5931_v17 = vld [vmem:[#allocation24_spill] sm:$0xff] }
 0x155   : > { %v3863_v16 = vpop.f32.mrf.mxu1  ;;  %4066 = vmatmul.mubr.msk.bf16.gmra.mxu1 %vm662_vm3, %v5916_v7 }
 0x156   : > { %v5367_v59 = vadd.f32 %v1501_v63, %v1109_v1  ;;  %v1130_v52 = vadd.f32 %v3863_v16, %v5171_v48  ;;  %v3898_v61 = vpop.f32.mrf.mxu0  ;;  %4069 = vmatprep.mubr.msk.bf16.mxu1 %vm662_vm3, %v4698_v5  ;;  %v2463_v5 = vrot.slane %v2462_v58, 4  ;;  %v2680_v50 = vsel %vm4703_vm7, %v2678_v4, %v2679_v25  ;;  %v5926_v63 = vld [vmem:[#allocation28_spill] sm:$0xff] }
 0x157   : > { %v1121_v0 = vpop.f32.mrf.mxu1  ;;  %v2458_v40 = vsel %vm4380_vm4, %v2453_v37, %v2457_v15 }
 0x158   : > { %v5373_v20 = vadd.f32 %v3897_v6, %v1130_v52  ;;  %v1122_v7 = vadd.f32 %v1121_v0, %v5177_v45  ;;  %v1517_v12 = vpop.f32.mrf.mxu0  ;;  %v2677_v45 = vsel %vm4703_vm7, %v3467_v19, %v2676_v57  ;;  %v2468_v60 = vsel %vm4380_vm4, %v2463_v5, %v2467_v28  ;;  %v5932_v19 = vld [vmem:[#allocation26_spill] sm:$0xff] }
 0x159   : > { %v3864_v41 = vpop.f32.mrf.mxu1  ;;  %v3450_v15 = vcombine.low %v2458_v40, %v2468_v60  ;;  %v5934_v5 = vld [vmem:[#allocation6_spill] sm:$0xff]  ;;  %v5936_v40 = vld [vmem:[#allocation9_spill] sm:$0xff] }
 0x15a   : > { %v5376_v55 = vadd.f32 %v1514_v13, %v1122_v7  ;;  %v1133_v48 = vadd.f32 %v3864_v41, %v5187_v22  ;;  %v3901_v51 = vpop.f32.mrf.mxu0  ;;  %4104 = vmatmul.mubr.msk.bf16.gmra.mxu0 %vm662_vm3, %v4949_v2 }
 0x15b   : > { %v1124_v21 = vpop.f32.mrf.mxu1  ;;  %4107 = vmatprep.mubr.msk.bf16.mxu0 %vm662_vm3, %v5028_v11  ;;  %v5928_v11 = vld [vmem:[#allocation23_spill] sm:$0xff] }
 0x15c   : > { %v5387_v10 = vadd.f32 %v3898_v61, %v1133_v48  ;;  %v1125_v22 = vadd.f32 %v1124_v21, %v5193_v49  ;;  %v1530_v27 = vpop.f32.mrf.mxu0  ;;  %v3469_v49 = vcombine.low %v2677_v45, %v2680_v50 }
 0x15d   : > { %v3867_v8 = vpop.f32.mrf.mxu1  ;;  %4070 = vmatmul.mubr.msk.bf16.gmra.mxu1 %vm662_vm3, %v5926_v63 }
 0x15e   : > { %v5394_v44 = vadd.f32 %v1517_v12, %v1125_v22  ;;  %v1146_v53 = vadd.f32 %v3867_v8, %v5928_v11  ;;  %v3902_v18 = vpop.f32.mrf.mxu0  ;;  %4073 = vmatprep.mubr.msk.bf16.mxu1 %vm662_vm3, %v5929_v47  ;;  %v5933_v12 = vld [vmem:[#allocation11_spill] sm:$0xff] }
 0x15f   : > { %v1137_v6 = vpop.f32.mrf.mxu1  ;;  %v5935_v22 = vld [vmem:[#allocation7_spill] sm:$0xff] }
 0x160   : > { %v5401_v57 = vadd.f32 %v3901_v51, %v1146_v53  ;;  %v1138_v33 = vadd.f32 %v1137_v6, %v5930_v29  ;;  %v1533_v1 = vpop.f32.mrf.mxu0 }
 0x161   : > { %v3868_v13 = vpop.f32.mrf.mxu1 }
 0x162   : > { %v5404_v16 = vadd.f32 %v1530_v27, %v1138_v33  ;;  %v1149_v52 = vadd.f32 %v3868_v13, %v5931_v17  ;;  %v3905_v61 = vpop.f32.mrf.mxu0  ;;  %4108 = vmatmul.mubr.msk.bf16.gmra.mxu0 %vm662_vm3, %v3469_v49 }
 0x163   : > { %v1140_v58 = vpop.f32.mrf.mxu1 }
 0x164   : > { %v5408_v31 = vadd.f32 %v3902_v18, %v1149_v52  ;;  %v1141_v0 = vadd.f32 %v1140_v58, %v5932_v19  ;;  %v1546_v4 = vpop.f32.mrf.mxu0 }
 0x165   : > { %v3871_v25 = vpop.f32.mrf.mxu1  ;;  %4074 = vmatmul.mubr.msk.bf16.gmra.mxu1 %vm662_vm3, %v3450_v15 }
 0x166   : > { %v5412_v7 = vadd.f32 %v1533_v1, %v1141_v0  ;;  %v1162_v41 = vadd.f32 %v3871_v25, %v5933_v12  ;;  %v3906_v37 = vpop.f32.mrf.mxu0 }
 0x167   : > { %v1153_v48 = vpop.f32.mrf.mxu1 }
 0x168   : > { %v5415_v51 = vadd.f32 %v3905_v61, %v1162_v41  ;;  %v1154_v28 = vadd.f32 %v1153_v48, %v5934_v5  ;;  %v1549_v21 = vpop.f32.mrf.mxu0 }
 0x169   : > { %v3872_v45 = vpop.f32.mrf.mxu1 }
 0x16a   : > { %v5418_v50 = vadd.f32 %v1546_v4, %v1154_v28  ;;  %v1165_v27 = vadd.f32 %v3872_v45, %v5935_v22  ;;  %v3945_v8 = vpop.f32.mrf.mxu0 }
 0x16b   : > { %v1156_v63 = vpop.f32.mrf.mxu1 }
 0x16c   : > { %v5421_v2 = vadd.f32 %v3906_v37, %v1165_v27  ;;  %v1157_v11 = vadd.f32 %v1156_v63, %v5936_v40  ;;  %v1868_v53 = vpop.f32.mrf.mxu0 }
 0x16d   : > { %v3911_v18 = vpop.f32.mrf.mxu1 }
 0x16e   : > { %v5424_v47 = vadd.f32 %v1549_v21, %v1157_v11  ;;  %v1769_v60 = vadd.f32 %v3911_v18, %v5266_v54  ;;  %v3946_v49 = vpop.f32.mrf.mxu0 }
 0x16f   : > { %v1640_v6 = vpop.f32.mrf.mxu1 }
 0x170   : > { %v5427_v29 = vadd.f32 %v3945_v8, %v1769_v60  ;;  %v1767_v33 = vadd.f32 %v1640_v6, %v5269_v32  ;;  %v1871_v1 = vpop.f32.mrf.mxu0 }
 0x171   : > { %v3912_v13 = vpop.f32.mrf.mxu1 }
 0x172   : > { %v5430_v15 = vadd.f32 %v1868_v53, %v1767_v33  ;;  %v1770_v17 = vadd.f32 %v3912_v13, %v5276_v46  ;;  %v3949_v52 = vpop.f32.mrf.mxu0 }
 0x173   : > { %v1643_v61 = vpop.f32.mrf.mxu1 }
 0x174   : > { %v5433_v58 = vadd.f32 %v3946_v49, %v1770_v17  ;;  %v1768_v19 = vadd.f32 %v1643_v61, %v5281_v38  ;;  %v1884_v0 = vpop.f32.mrf.mxu0 }
 0x175   : > { %v3915_v54 = vpop.f32.mrf.mxu1 }
 0x176   : > { %v5436_v4 = vadd.f32 %v1871_v1, %v1768_v19  ;;  %v1773_v25 = vadd.f32 %v3915_v54, %v5286_v3  ;;  %v3950_v12 = vpop.f32.mrf.mxu0 }
 0x177   : > { %v1656_v32 = vpop.f32.mrf.mxu1 }
 0x178   : > { %v5439_v41 = vadd.f32 %v3949_v52, %v1773_v25  ;;  %v1771_v37 = vadd.f32 %v1656_v32, %v5289_v9  ;;  %v1887_v48 = vpop.f32.mrf.mxu0 }
 0x179   : > { %v3916_v46 = vpop.f32.mrf.mxu1 }
 0x17a   : > { %v5442_v5 = vadd.f32 %v1884_v0, %v1771_v37  ;;  %v1774_v28 = vadd.f32 %v3916_v46, %v5296_v36  ;;  %v3953_v21 = vpop.f32.mrf.mxu0 }
 0x17b   : > { %v1659_v38 = vpop.f32.mrf.mxu1 }
 0x17c   : > { %v5445_v45 = vadd.f32 %v3950_v12, %v1774_v28  ;;  %v1772_v22 = vadd.f32 %v1659_v38, %v5301_v14  ;;  %v1900_v27 = vpop.f32.mrf.mxu0 }
 0x17d   : > { %v3919_v3 = vpop.f32.mrf.mxu1 }
 0x17e   : > { %v5448_v8 = vadd.f32 %v1887_v48, %v1772_v22  ;;  %v1777_v63 = vadd.f32 %v3919_v3, %v5306_v42  ;;  %v3954_v40 = vpop.f32.mrf.mxu0 }
 0x17f   : > { %v1672_v9 = vpop.f32.mrf.mxu1 }
 0x180   : > { %v5451_v11 = vadd.f32 %v3953_v21, %v1777_v63  ;;  %v1775_v53 = vadd.f32 %v1672_v9, %v5309_v24  ;;  %v1903_v18 = vpop.f32.mrf.mxu0 }
 0x181   : > { %v3920_v36 = vpop.f32.mrf.mxu1 }
 0x182   : > { %v5454_v60 = vadd.f32 %v1900_v27, %v1775_v53  ;;  %v1778_v49 = vadd.f32 %v3920_v36, %v5316_v26  ;;  %v3957_v6 = vpop.f32.mrf.mxu0 }
 0x183   : > { %v1675_v14 = vpop.f32.mrf.mxu1 }
 0x184   : > { %v5457_v33 = vadd.f32 %v3954_v40, %v1778_v49  ;;  %v1776_v1 = vadd.f32 %v1675_v14, %v5321_v30  ;;  %v1916_v13 = vpop.f32.mrf.mxu0 }
 0x185   : > { %v3923_v42 = vpop.f32.mrf.mxu1 }
 0x186   : > { %v5460_v17 = vadd.f32 %v1903_v18, %v1776_v1  ;;  %v1781_v52 = vadd.f32 %v3923_v42, %v5326_v62  ;;  %v3958_v61 = vpop.f32.mrf.mxu0 }
 0x187   : > { %v1688_v24 = vpop.f32.mrf.mxu1 }
 0x188   : > { %v5463_v19 = vadd.f32 %v3957_v6, %v1781_v52  ;;  %v1779_v0 = vadd.f32 %v1688_v24, %v5329_v34  ;;  %v1919_v54 = vpop.f32.mrf.mxu0 }
 0x189   : > { %v3924_v26 = vpop.f32.mrf.mxu1 }
 0x18a   : > { %v5466_v25 = vadd.f32 %v1916_v13, %v1779_v0  ;;  %v1782_v12 = vadd.f32 %v3924_v26, %v5336_v35  ;;  %v3961_v32 = vpop.f32.mrf.mxu0 }
 0x18b   : > { %v1691_v30 = vpop.f32.mrf.mxu1 }
 0x18c   : > { %v5469_v37 = vadd.f32 %v3958_v61, %v1782_v12  ;;  %v1780_v48 = vadd.f32 %v1691_v30, %v5345_v39  ;;  %v1932_v46 = vpop.f32.mrf.mxu0 }
 0x18d   : > { %v3927_v62 = vpop.f32.mrf.mxu1 }
 0x18e   : > { %v5472_v28 = vadd.f32 %v1919_v54, %v1780_v48  ;;  %v1785_v21 = vadd.f32 %v3927_v62, %v5350_v23  ;;  %v3962_v38 = vpop.f32.mrf.mxu0 }
 0x18f   : > { %v1704_v34 = vpop.f32.mrf.mxu1 }
 0x190   : > { %v5475_v22 = vadd.f32 %v3961_v32, %v1785_v21  ;;  %v1783_v27 = vadd.f32 %v1704_v34, %v5353_v56  ;;  %v1935_v3 = vpop.f32.mrf.mxu0 }
 0x191   : > { %v3928_v35 = vpop.f32.mrf.mxu1 }
 0x192   : > { %v5478_v63 = vadd.f32 %v1932_v46, %v1783_v27  ;;  %v1786_v40 = vadd.f32 %v3928_v35, %v5362_v43  ;;  %v3965_v9 = vpop.f32.mrf.mxu0 }
 0x193   : > { %v1707_v39 = vpop.f32.mrf.mxu1 }
 0x194   : > { %v5481_v53 = vadd.f32 %v3962_v38, %v1786_v40  ;;  %v1784_v18 = vadd.f32 %v1707_v39, %v5367_v59  ;;  %v1948_v36 = vpop.f32.mrf.mxu0 }
 0x195   : > { %v3931_v23 = vpop.f32.mrf.mxu1 }
 0x196   : > { %v5484_v49 = vadd.f32 %v1935_v3, %v1784_v18  ;;  %v1789_v6 = vadd.f32 %v3931_v23, %v5373_v20  ;;  %v3966_v14 = vpop.f32.mrf.mxu0 }
 0x197   : > { %v1720_v56 = vpop.f32.mrf.mxu1 }
 0x198   : > { %v5487_v1 = vadd.f32 %v3965_v9, %v1789_v6  ;;  %v1787_v13 = vadd.f32 %v1720_v56, %v5376_v55  ;;  %v1951_v42 = vpop.f32.mrf.mxu0 }
 0x199   : > { %v3932_v43 = vpop.f32.mrf.mxu1 }
 0x19a   : > { %v5490_v52 = vadd.f32 %v1948_v36, %v1787_v13  ;;  %v1790_v61 = vadd.f32 %v3932_v43, %v5387_v10  ;;  %v3969_v24 = vpop.f32.mrf.mxu0 }
 0x19b   : > { %v1723_v59 = vpop.f32.mrf.mxu1 }
 0x19c   : > { %v5493_v0 = vadd.f32 %v3966_v14, %v1790_v61  ;;  %v1788_v54 = vadd.f32 %v1723_v59, %v5394_v44  ;;  %v1964_v26 = vpop.f32.mrf.mxu0 }
 0x19d   : > { %v3935_v20 = vpop.f32.mrf.mxu1 }
 0x19e   : > { %v5496_v12 = vadd.f32 %v1951_v42, %v1788_v54  ;;  %v1793_v32 = vadd.f32 %v3935_v20, %v5401_v57  ;;  %v3970_v30 = vpop.f32.mrf.mxu0 }
 0x19f   : > { %v1736_v55 = vpop.f32.mrf.mxu1 }
 0x1a0   : > { %v5499_v48 = vadd.f32 %v3969_v24, %v1793_v32  ;;  %v1791_v46 = vadd.f32 %v1736_v55, %v5404_v16  ;;  %v1967_v62 = vpop.f32.mrf.mxu0 }
 0x1a1   : > { %v3936_v10 = vpop.f32.mrf.mxu1 }
 0x1a2   : > { %v5502_v21 = vadd.f32 %v1964_v26, %v1791_v46  ;;  %v1794_v38 = vadd.f32 %v3936_v10, %v5408_v31  ;;  %v3973_v34 = vpop.f32.mrf.mxu0 }
 0x1a3   : > { %v1739_v44 = vpop.f32.mrf.mxu1 }
 0x1a4   : > { %v5505_v27 = vadd.f32 %v3970_v30, %v1794_v38  ;;  %v1792_v3 = vadd.f32 %v1739_v44, %v5412_v7  ;;  %v1980_v35 = vpop.f32.mrf.mxu0 }
 0x1a5   : > { %v3939_v57 = vpop.f32.mrf.mxu1 }
 0x1a6   : > { %5937 = vst [vmem:[#allocation12_spill] sm:$0xff] %v5505_v27  ;;  %v5508_v40 = vadd.f32 %v1967_v62, %v1792_v3  ;;  %v1797_v9 = vadd.f32 %v3939_v57, %v5415_v51  ;;  %v3974_v39 = vpop.f32.mrf.mxu0 }
 0x1a7   : > { %v1752_v16 = vpop.f32.mrf.mxu1 }
 0x1a8   : > { %5938 = vst [vmem:[#allocation10_spill] sm:$0xff] %v5508_v40  ;;  %v5511_v18 = vadd.f32 %v3973_v34, %v1797_v9  ;;  %v1795_v36 = vadd.f32 %v1752_v16, %v5418_v50  ;;  %v1983_v23 = vpop.f32.mrf.mxu0 }
 0x1a9   : > { %v3940_v31 = vpop.f32.mrf.mxu1 }
 0x1aa   : > { %v5514_v6 = vadd.f32 %v1980_v35, %v1795_v36  ;;  %v1798_v14 = vadd.f32 %v3940_v31, %v5421_v2  ;;  %v4013_v56 = vpop.f32.mrf.mxu0 }
 0x1ab   : > { %v1755_v7 = vpop.f32.mrf.mxu1 }
 0x1ac   : > { %v5517_v13 = vadd.f32 %v3974_v39, %v1798_v14  ;;  %v1796_v42 = vadd.f32 %v1755_v7, %v5424_v47  ;;  %v2286_v43 = vpop.f32.mrf.mxu0 }
 0x1ad   : > { %v3979_v51 = vpop.f32.mrf.mxu1 }
 0x1ae   : > { %5939 = vst [vmem:[#allocation14_spill] sm:$0xff] %v5517_v13  ;;  %v5520_v61 = vadd.f32 %v1983_v23, %v1796_v42  ;;  %v2209_v24 = vadd.f32 %v3979_v51, %v5427_v29  ;;  %v5523_v59 = vpop.f32.mrf.mxu0 }
 0x1af   : > { %v2080_v50 = vpop.f32.mrf.mxu1 }
 0x1b0   : > { %5940 = vst [vmem:[#allocation16_spill] sm:$0xff] %v5520_v61  ;;  %v5525_v54 = vadd.f32 %v4013_v56, %v2209_v24  ;;  %v2207_v26 = vadd.f32 %v2080_v50, %v5430_v15  ;;  %v5528_v2 = vpop.f32.mrf.mxu0 }
 0x1b1   : > { %v5530_v20 = vpop.f32.mrf.mxu1 }
 0x1b2   : > { %v5532_v32 = vadd.f32 %v2286_v43, %v2207_v26  ;;  %v4017_v47 = vpop.f32.mrf.mxu0 }
 0x1b3   : > { %v5534_v30 = vpop.f32.mrf.mxu1 }
 0x1b4   : > { %v2302_v55 = vpop.f32.mrf.mxu0 }
 0x1b5   : > { %v3983_v46 = vpop.f32.mrf.mxu1 }
 0x1b6   : > { %v2213_v29 = vadd.f32 %v3983_v46, %v5439_v41  ;;  %v5537_v62 = vpop.f32.mrf.mxu0 }
 0x1b7   : > { %v2096_v10 = vpop.f32.mrf.mxu1 }
 0x1b8   : > { %v5539_v38 = vadd.f32 %v4017_v47, %v2213_v29  ;;  %v2211_v15 = vadd.f32 %v2096_v10, %v5442_v5  ;;  %v5542_v34 = vpop.f32.mrf.mxu0 }
 0x1b9   : > { %v5544_v44 = vpop.f32.mrf.mxu1 }
 0x1ba   : > { %v5546_v3 = vadd.f32 %v2302_v55, %v2211_v15  ;;  %v4021_v35 = vpop.f32.mrf.mxu0 }
 0x1bb   : > { %v5548_v57 = vpop.f32.mrf.mxu1 }
 0x1bc   : > { %v2318_v9 = vpop.f32.mrf.mxu0 }
 0x1bd   : > { %v3987_v39 = vpop.f32.mrf.mxu1 }
 0x1be   : > { %v2217_v41 = vadd.f32 %v3987_v39, %v5451_v11  ;;  %v5551_v16 = vpop.f32.mrf.mxu0 }
 0x1bf   : > { %v2112_v36 = vpop.f32.mrf.mxu1 }
 0x1c0   : > { %v5553_v23 = vadd.f32 %v4021_v35, %v2217_v41  ;;  %v2215_v5 = vadd.f32 %v2112_v36, %v5454_v60  ;;  %v5556_v31 = vpop.f32.mrf.mxu0 }
 0x1c1   : > { %v5558_v14 = vpop.f32.mrf.mxu1 }
 0x1c2   : > { %v5560_v56 = vadd.f32 %v2318_v9, %v2215_v5  ;;  %v4025_v7 = vpop.f32.mrf.mxu0 }
 0x1c3   : > { %v5562_v42 = vpop.f32.mrf.mxu1 }
 0x1c4   : > { %v2334_v43 = vpop.f32.mrf.mxu0 }
 0x1c5   : > { %v3991_v51 = vpop.f32.mrf.mxu1 }
 0x1c6   : > { %v2221_v11 = vadd.f32 %v3991_v51, %v5463_v19  ;;  %v5565_v24 = vpop.f32.mrf.mxu0 }
 0x1c7   : > { %v2128_v50 = vpop.f32.mrf.mxu1 }
 0x1c8   : > { %v5567_v26 = vadd.f32 %v4025_v7, %v2221_v11  ;;  %v2219_v60 = vadd.f32 %v2128_v50, %v5466_v25  ;;  %v5570_v47 = vpop.f32.mrf.mxu0 }
 0x1c9   : > { %v5572_v55 = vpop.f32.mrf.mxu1 }
 0x1ca   : > { %v5574_v46 = vadd.f32 %v2334_v43, %v2219_v60  ;;  %v4029_v29 = vpop.f32.mrf.mxu0 }
 0x1cb   : > { %v5576_v10 = vpop.f32.mrf.mxu1 }
 0x1cc   : > { %v2350_v15 = vpop.f32.mrf.mxu0 }
 0x1cd   : > { %v3995_v35 = vpop.f32.mrf.mxu1 }
 0x1ce   : > { %v2225_v19 = vadd.f32 %v3995_v35, %v5475_v22  ;;  %v5579_v9 = vpop.f32.mrf.mxu0 }
 0x1cf   : > { %v2144_v39 = vpop.f32.mrf.mxu1 }
 0x1d0   : > { %v5581_v41 = vadd.f32 %v4029_v29, %v2225_v19  ;;  %v2223_v25 = vadd.f32 %v2144_v39, %v5478_v63  ;;  %v5584_v36 = vpop.f32.mrf.mxu0 }
 0x1d1   : > { %v5586_v5 = vpop.f32.mrf.mxu1 }
 0x1d2   : > { %v5588_v7 = vadd.f32 %v2350_v15, %v2223_v25  ;;  %v4033_v43 = vpop.f32.mrf.mxu0 }
 0x1d3   : > { %v5590_v51 = vpop.f32.mrf.mxu1 }
 0x1d4   : > { %v2366_v11 = vpop.f32.mrf.mxu0 }
 0x1d5   : > { %v3999_v50 = vpop.f32.mrf.mxu1 }
 0x1d6   : > { %v2229_v22 = vadd.f32 %v3999_v50, %v5487_v1  ;;  %v5593_v60 = vpop.f32.mrf.mxu0 }
 0x1d7   : > { %v2160_v35 = vpop.f32.mrf.mxu1 }
 0x1d8   : > { %v5595_v29 = vadd.f32 %v4033_v43, %v2229_v22  ;;  %v2227_v63 = vadd.f32 %v2160_v35, %v5490_v52  ;;  %v5598_v19 = vpop.f32.mrf.mxu0 }
 0x1d9   : > { %5942 = vst [vmem:[#allocation22_spill] sm:$0xff] %v5598_v19  ;;  %v5600_v39 = vpop.f32.mrf.mxu1 }
 0x1da   : > { %5941 = vst [vmem:[#allocation18_spill] sm:$0xff] %v5595_v29  ;;  %v5602_v15 = vadd.f32 %v2366_v11, %v2227_v63  ;;  %v4037_v25 = vpop.f32.mrf.mxu0 }
 0x1db   : > { %v5604_v61 = vpop.f32.mrf.mxu1 }
 0x1dc   : > { %5943 = vst [vmem:[#allocation27_spill] sm:$0xff] %v5602_v15  ;;  %v2382_v13 = vpop.f32.mrf.mxu0 }
 0x1dd   : > { %v4003_v40 = vpop.f32.mrf.mxu1 }
 0x1de   : > { %v2233_v1 = vadd.f32 %v4003_v40, %v5499_v48  ;;  %v5607_v50 = vpop.f32.mrf.mxu0 }
 0x1df   : > { %5944 = vst [vmem:[#allocation8_spill] sm:$0xff] %v5607_v50  ;;  %v2176_v27 = vpop.f32.mrf.mxu1 }
 0x1e0   : > { %v5609_v43 = vadd.f32 %v4037_v25, %v2233_v1  ;;  %v2231_v52 = vadd.f32 %v2176_v27, %v5502_v21  ;;  %v5612_v22 = vpop.f32.mrf.mxu0 }
 0x1e1   : > { %v5614_v35 = vpop.f32.mrf.mxu1 }
 0x1e2   : > { %5945 = vst [vmem:[#allocation13_spill] sm:$0xff] %v5609_v43  ;;  %v5616_v11 = vadd.f32 %v2382_v13, %v2231_v52  ;;  %v4041_v63 = vpop.f32.mrf.mxu0  ;;  %v2210_v43 = vadd.f32 %v5530_v20, %v5433_v58 }
 0x1e3   : > { %v5618_v15 = vpop.f32.mrf.mxu1 }
 0x1e4   : > { %5946 = vst [vmem:[#allocation15_spill] sm:$0xff] %v5616_v11  ;;  %v2398_v29 = vpop.f32.mrf.mxu0 }
 0x1e5   : > { %v4007_v19 = vpop.f32.mrf.mxu1 }
 0x1e6   : > { %v2237_v48 = vadd.f32 %v4007_v19, %v5511_v18  ;;  %v5621_v40 = vpop.f32.mrf.mxu0 }
 0x1e7   : > { %5947 = vst [vmem:[#allocation17_spill] sm:$0xff] %v5621_v40  ;;  %v2192_v50 = vpop.f32.mrf.mxu1 }
 0x1e8   : > { %v5623_v25 = vadd.f32 %v4041_v63, %v2237_v48  ;;  %v2235_v21 = vadd.f32 %v2192_v50, %v5514_v6  ;;  %v5626_v27 = vpop.f32.mrf.mxu0  ;;  %v2208_v6 = vadd.f32 %v5534_v30, %v5436_v4  ;;  %v2416_v48 = vadd.f32 %v5523_v59, %v2210_v43 }
 0x1e9   : > { %5949 = vst [vmem:[#allocation25_spill] sm:$0xff] %v5626_v27  ;;  %v5628_v1 = vpop.f32.mrf.mxu1 }
 0x1ea   : > { %5948 = vst [vmem:[#allocation20_spill] sm:$0xff] %v5623_v25  ;;  %v5630_v13 = vadd.f32 %v2398_v29, %v2235_v21  ;;  %v4081_v52 = vpop.f32.mrf.mxu0  ;;  %v5642_v29 = vld [vmem:[%s5815_s2] ss:$0 sm:$0xff]  ;;  %v2414_v25 = vadd.f32 %v5528_v2, %v2208_v6 }
 0x1eb   : > { %v5632_v11 = vpop.f32.mrf.mxu1 }
 0x1ec   : > { %5950 = vst [vmem:[#allocation28_spill] sm:$0xff] %v5630_v13  ;;  %5951 = vst [vmem:[#allocation5_spill] sm:$0xff] %v5632_v11  ;;  %v2726_v18 = vpop.f32.mrf.mxu0  ;;  %v2212_v11 = vadd.f32 %v5548_v57, %v5448_v8  ;;  %v2218_v8 = vadd.f32 %v5558_v14, %v5457_v33 }
 0x1ed   : > { %v4047_v19 = vpop.f32.mrf.mxu1 }
 0x1ee   : > { %v2643_v40 = vadd.f32 %v4047_v19, %v5525_v54  ;;  %v4082_v63 = vpop.f32.mrf.mxu0  ;;  %v2214_v54 = vadd.f32 %v5544_v44, %v5445_v45  ;;  %v2418_v2 = vadd.f32 %v5542_v34, %v2212_v11 }
 0x1ef   : > { %v2514_v50 = vpop.f32.mrf.mxu1 }
 0x1f0   : > { %v2855_v21 = vadd.f32 %v4081_v52, %v2643_v40  ;;  %v2641_v58 = vadd.f32 %v2514_v50, %v5532_v32  ;;  %v2729_v20 = vpop.f32.mrf.mxu0  ;;  %v2420_v44 = vadd.f32 %v5537_v62, %v2214_v54 }
 0x1f1   : > { %v4048_v13 = vpop.f32.mrf.mxu1 }
 0x1f2   : > { %v2894_v19 = vadd.f32 %v5642_v29, %v2855_v21  ;;  %v2853_v4 = vadd.f32 %v2726_v18, %v2641_v58  ;;  %v2644_v30 = vadd.f32 %v4048_v13, %v2416_v48  ;;  %v4085_v27 = vpop.f32.mrf.mxu0 }
 0x1f3   : > { %v2517_v59 = vpop.f32.mrf.mxu1 }
 0x1f4   : > { %v2856_v43 = vadd.f32 %v4082_v63, %v2644_v30  ;;  %v2742_v32 = vpop.f32.mrf.mxu0  ;;  %v2958_v40 = vmul.f32 0.25, %v2894_v19  ;;  %v2892_v52 = vadd.f32 %v5642_v29, %v2853_v4  ;;  %v2642_v50 = vadd.f32 %v2517_v59, %v2414_v25 }
 0x1f5   : > { %v4051_v45 = vpop.f32.mrf.mxu1  ;;  %vm2926_vm8 = vcmp.ge.f32.partialorder %v2894_v19, 0.0  ;;  %v2216_v25 = vadd.f32 %v5562_v42, %v5460_v17 }
 0x1f6   : > { %v2895_v13 = vadd.f32 %v5642_v29, %v2856_v43  ;;  %v4086_v18 = vpop.f32.mrf.mxu0  ;;  %v2854_v57 = vadd.f32 %v2729_v20, %v2642_v50  ;;  %v2647_v63 = vadd.f32 %v4051_v45, %v5539_v38  ;;  %v2990_v58 = vsel %vm2926_vm8, %v2894_v19, %v2958_v40 }
 0x1f7   : > { %v2530_v6 = vpop.f32.mrf.mxu1  ;;  %v2956_v54 = vmul.f32 0.25, %v2892_v52  ;;  %vm2924_vm10 = vcmp.ge.f32.partialorder %v2892_v52, 0.0  ;;  %v2424_v19 = vadd.f32 %v5551_v16, %v2218_v8  ;;  %v2222_v16 = vadd.f32 %v5572_v55, %v5469_v37 }
 0x1f8   : > { %vm2927_vm9 = vcmp.ge.f32.partialorder %v2895_v13, 0.0  ;;  %v2959_v62 = vmul.f32 0.25, %v2895_v13  ;;  %v2645_v48 = vadd.f32 %v2530_v6, %v5546_v3  ;;  %v2745_v21 = vpop.f32.mrf.mxu0  ;;  %v2893_v34 = vadd.f32 %v5642_v29, %v2854_v57 }
 0x1f9   : > { %v2859_v11 = vadd.f32 %v4085_v27, %v2647_v63  ;;  %v4052_v33 = vpop.f32.mrf.mxu1  ;;  %v2988_v40 = vsel %vm2924_vm10, %v2892_v52, %v2956_v54  ;;  %v2220_v6 = vadd.f32 %v5576_v10, %v5472_v28 }
 0x1fa   : > { %v2991_v14 = vsel %vm2927_vm9, %v2895_v13, %v2959_v62  ;;  %v2857_v20 = vadd.f32 %v2742_v32, %v2645_v48  ;;  %v2648_v4 = vadd.f32 %v4052_v33, %v2420_v44  ;;  %v4089_v38 = vpop.f32.mrf.mxu0  ;;  %vm2925_vm11 = vcmp.ge.f32.partialorder %v2893_v34, 0.0 }
 0x1fb   : > { %v3565_v30 = vpack.c.bf16 %v2991_v14, %v2990_v58  ;;  %v2957_v59 = vmul.f32 0.25, %v2893_v34  ;;  %v2898_v17 = vadd.f32 %v5642_v29, %v2859_v11  ;;  %v2533_v42 = vpop.f32.mrf.mxu1  ;;  %v2422_v44 = vadd.f32 %v5556_v31, %v2216_v25 }
 0x1fc   : > { %v2860_v43 = vadd.f32 %v4086_v18, %v2648_v4  ;;  %v2646_v3 = vadd.f32 %v2533_v42, %v2418_v2  ;;  %v2758_v50 = vpop.f32.mrf.mxu0  ;;  %v2896_v32 = vadd.f32 %v5642_v29, %v2857_v20 }
 0x1fd   : > { %3637 = vst [vmem:[%s5668_s6 + $0x8] sm:$0xff] %v3565_v30   ;;  %v2989_v27 = vsel %vm2925_vm11, %v2893_v34, %v2957_v59  ;;  %v4055_v45 = vpop.f32.mrf.mxu1  ;;  %v2962_v57 = vmul.f32 0.25, %v2898_v17  ;;  %vm2930_vm12 = vcmp.ge.f32.partialorder %v2898_v17, 0.0  ;;  %v2428_v30 = vadd.f32 %v5565_v24, %v2222_v16 }
 0x1fe   : > { %v3560_v13 = vpack.c.bf16 %v2989_v27, %v2988_v40  ;;  %v2899_v18 = vadd.f32 %v5642_v29, %v2860_v43  ;;  %v4090_v2 = vpop.f32.mrf.mxu0  ;;  %v2858_v52 = vadd.f32 %v2745_v21, %v2646_v3  ;;  %v2651_v8 = vadd.f32 %v4055_v45, %v5553_v23 }
 0x1ff   : > { %v2546_v63 = vpop.f32.mrf.mxu1  ;;  %vm2928_vm14 = vcmp.ge.f32.partialorder %v2896_v32, 0.0  ;;  %v2960_v48 = vmul.f32 0.25, %v2896_v32  ;;  %v2994_v55 = vsel %vm2930_vm12, %v2898_v17, %v2962_v57  ;;  %v2426_v43 = vadd.f32 %v5570_v47, %v2220_v6 }
 0x200   : > { %3561 = vst [vmem:[%s5668_s6] sm:$0xff] %v3560_v13   ;;  %vm2931_vm13 = vcmp.ge.f32.partialorder %v2899_v18, 0.0  ;;  %v2963_v62 = vmul.f32 0.25, %v2899_v18  ;;  %v2649_v31 = vadd.f32 %v2546_v63, %v5560_v56  ;;  %v2761_v25 = vpop.f32.mrf.mxu0  ;;  %v2897_v58 = vadd.f32 %v5642_v29, %v2858_v52 }
 0x201   : > { %v2863_v54 = vadd.f32 %v4089_v38, %v2651_v8  ;;  %v4056_v37 = vpop.f32.mrf.mxu1  ;;  %v2992_v38 = vsel %vm2928_vm14, %v2896_v32, %v2960_v48  ;;  %v2226_v27 = vadd.f32 %v5586_v5, %v5481_v53 }
 0x202   : > { %v2995_v21 = vsel %vm2931_vm13, %v2899_v18, %v2963_v62  ;;  %v2861_v23 = vadd.f32 %v2758_v50, %v2649_v31  ;;  %v2652_v34 = vadd.f32 %v4056_v37, %v2424_v19  ;;  %v4093_v11 = vpop.f32.mrf.mxu0  ;;  %vm2929_vm15 = vcmp.ge.f32.partialorder %v2897_v58, 0.0 }
 0x203   : > { %v3575_v33 = vpack.c.bf16 %v2995_v21, %v2994_v55  ;;  %v2961_v28 = vmul.f32 0.25, %v2897_v58  ;;  %v2902_v10 = vadd.f32 %v5642_v29, %v2863_v54  ;;  %v2549_v14 = vpop.f32.mrf.mxu1  ;;  %v2432_v48 = vadd.f32 %v5579_v9, %v2226_v27 }
 0x204   : > { %v2864_v56 = vadd.f32 %v4090_v2, %v2652_v34  ;;  %v2650_v20 = vadd.f32 %v2549_v14, %v2422_v44  ;;  %v2774_v4 = vpop.f32.mrf.mxu0  ;;  %v2900_v17 = vadd.f32 %v5642_v29, %v2861_v23  ;;  %v2224_v44 = vadd.f32 %v5590_v51, %v5484_v49 }
 0x205   : > { %3639 = vst [vmem:[%s5668_s6 + $0x18] sm:$0xff] %v3575_v33   ;;  %v2993_v59 = vsel %vm2929_vm15, %v2897_v58, %v2961_v28  ;;  %v4059_v42 = vpop.f32.mrf.mxu1  ;;  %v2966_v50 = vmul.f32 0.25, %v2902_v10  ;;  %vm2934_vm0 = vcmp.ge.f32.partialorder %v2902_v10, 0.0  ;;  %v2230_v28 = vadd.f32 %v5600_v39, %v5493_v0 }
 0x206   : > { %v3570_v3 = vpack.c.bf16 %v2993_v59, %v2992_v38  ;;  %v2903_v19 = vadd.f32 %v5642_v29, %v2864_v56  ;;  %v4094_v40 = vpop.f32.mrf.mxu0  ;;  %v2862_v24 = vadd.f32 %v2761_v25, %v2650_v20  ;;  %v2655_v32 = vadd.f32 %v4059_v42, %v5567_v26 }
 0x207   : > { %v2562_v45 = vpop.f32.mrf.mxu1  ;;  %vm2932_vm2 = vcmp.ge.f32.partialorder %v2900_v17, 0.0  ;;  %v2964_v18 = vmul.f32 0.25, %v2900_v17  ;;  %v2998_v5 = vsel %vm2934_vm0, %v2902_v10, %v2966_v50  ;;  %v2430_v21 = vadd.f32 %v5584_v36, %v2224_v44 }
 0x208   : > { %3638 = vst [vmem:[%s5668_s6 + $0x10] sm:$0xff] %v3570_v3   ;;  %vm2935_vm1 = vcmp.ge.f32.partialorder %v2903_v19, 0.0  ;;  %v2967_v13 = vmul.f32 0.25, %v2903_v19  ;;  %v2653_v47 = vadd.f32 %v2562_v45, %v5574_v46  ;;  %v2777_v57 = vpop.f32.mrf.mxu0  ;;  %v2901_v2 = vadd.f32 %v5642_v29, %v2862_v24 }
 0x209   : > { %v2867_v16 = vadd.f32 %v4093_v11, %v2655_v32  ;;  %v4060_v53 = vpop.f32.mrf.mxu1  ;;  %v2996_v58 = vsel %vm2932_vm2, %v2900_v17, %v2964_v18  ;;  %v2228_v56 = vadd.f32 %v5604_v61, %v5496_v12  ;;  %v2436_v27 = vadd.f32 %v5593_v60, %v2230_v28 }
 0x20a   : > { %v2999_v52 = vsel %vm2935_vm1, %v2903_v19, %v2967_v13  ;;  %v2865_v26 = vadd.f32 %v2774_v4, %v2653_v47  ;;  %v2656_v8 = vadd.f32 %v4060_v53, %v2428_v30  ;;  %v4097_v63 = vpop.f32.mrf.mxu0  ;;  %vm2933_vm3 = vcmp.ge.f32.partialorder %v2901_v2, 0.0  ;;  %v5952_v13 = vld [vmem:[#allocation22_spill] sm:$0xff]  ;;  %v5953_v53 = vld [vmem:[#allocation12_spill] sm:$0xff] }
 0x20b   : > { %v3585_v6 = vpack.c.bf16 %v2999_v52, %v2998_v5  ;;  %v2965_v49 = vmul.f32 0.25, %v2901_v2  ;;  %v2906_v51 = vadd.f32 %v5642_v29, %v2867_v16  ;;  %v2565_v62 = vpop.f32.mrf.mxu1  ;;  %v2434_v47 = vadd.f32 %v5952_v13, %v2228_v56  ;;  %v5954_v52 = vld [vmem:[#allocation18_spill] sm:$0xff] }
 0x20c   : > { %v2868_v46 = vadd.f32 %v4094_v40, %v2656_v8  ;;  %v2654_v31 = vadd.f32 %v2565_v62, %v2426_v43  ;;  %v2790_v25 = vpop.f32.mrf.mxu0  ;;  %v2904_v37 = vadd.f32 %v5642_v29, %v2865_v26  ;;  %v2234_v5 = vadd.f32 %v5614_v35, %v5953_v53  ;;  %v5962_v53 = vld [vmem:[#allocation5_spill] sm:$0xff] }
 0x20d   : > { %3641 = vst [vmem:[%s5668_s6 + $0x28] sm:$0xff] %v3585_v6   ;;  %v2997_v54 = vsel %vm2933_vm3, %v2901_v2, %v2965_v49  ;;  %v4063_v55 = vpop.f32.mrf.mxu1  ;;  %v2970_v34 = vmul.f32 0.25, %v2906_v51  ;;  %vm2938_vm4 = vcmp.ge.f32.partialorder %v2906_v51, 0.0 }
 0x20e   : > { %v3580_v23 = vpack.c.bf16 %v2997_v54, %v2996_v58  ;;  %v2907_v11 = vadd.f32 %v5642_v29, %v2868_v46  ;;  %v4098_v33 = vpop.f32.mrf.mxu0  ;;  %v2866_v9 = vadd.f32 %v2777_v57, %v2654_v31  ;;  %v2659_v10 = vadd.f32 %v4063_v55, %v5581_v41 }
 0x20f   : > { %v2578_v14 = vpop.f32.mrf.mxu1  ;;  %vm2936_vm6 = vcmp.ge.f32.partialorder %v2904_v37, 0.0  ;;  %v2968_v30 = vmul.f32 0.25, %v2904_v37  ;;  %v3002_v39 = vsel %vm2938_vm4, %v2906_v51, %v2970_v34  ;;  %v5956_v51 = vld [vmem:[#allocation27_spill] sm:$0xff] }
 0x210   : > { %3640 = vst [vmem:[%s5668_s6 + $0x20] sm:$0xff] %v3580_v23   ;;  %vm2939_vm5 = vcmp.ge.f32.partialorder %v2907_v11, 0.0  ;;  %v2971_v20 = vmul.f32 0.25, %v2907_v11  ;;  %v2657_v36 = vadd.f32 %v2578_v14, %v5588_v7  ;;  %v2793_v4 = vpop.f32.mrf.mxu0  ;;  %v2905_v38 = vadd.f32 %v5642_v29, %v2866_v9 }
 0x211   : > { %v2871_v59 = vadd.f32 %v4097_v63, %v2659_v10  ;;  %v4064_v0 = vpop.f32.mrf.mxu1  ;;  %v3000_v24 = vsel %vm2936_vm6, %v2904_v37, %v2968_v30  ;;  %v5955_v63 = vld [vmem:[#allocation10_spill] sm:$0xff] }
 0x212   : > { %v3003_v17 = vsel %vm2939_vm5, %v2907_v11, %v2971_v20  ;;  %v2869_v41 = vadd.f32 %v2790_v25, %v2657_v36  ;;  %v2660_v42 = vadd.f32 %v4064_v0, %v2432_v48  ;;  %v4101_v43 = vpop.f32.mrf.mxu0  ;;  %vm2937_vm7 = vcmp.ge.f32.partialorder %v2905_v38, 0.0  ;;  %v5957_v36 = vld [vmem:[#allocation8_spill] sm:$0xff] }
 0x213   : > { %v3595_v3 = vpack.c.bf16 %v3003_v17, %v3002_v39  ;;  %v2969_v12 = vmul.f32 0.25, %v2905_v38  ;;  %v2910_v61 = vadd.f32 %v5642_v29, %v2871_v59  ;;  %v2581_v50 = vpop.f32.mrf.mxu1  ;;  %v2232_v6 = vadd.f32 %v5618_v15, %v5955_v63 }
 0x214   : > { %v2872_v7 = vadd.f32 %v4098_v33, %v2660_v42  ;;  %v2658_v19 = vadd.f32 %v2581_v50, %v2430_v21  ;;  %v2806_v40 = vpop.f32.mrf.mxu0  ;;  %v2908_v45 = vadd.f32 %v5642_v29, %v2869_v41  ;;  %v5958_v41 = vld [vmem:[#allocation13_spill] sm:$0xff]  ;;  %v5960_v50 = vld [vmem:[#allocation15_spill] sm:$0xff] }
 0x215   : > { %3643 = vst [vmem:[%s5668_s6 + $0x38] sm:$0xff] %v3595_v3   ;;  %v3001_v32 = vsel %vm2937_vm7, %v2905_v38, %v2969_v12  ;;  %v4067_v44 = vpop.f32.mrf.mxu1  ;;  %v2974_v18 = vmul.f32 0.25, %v2910_v61  ;;  %vm2942_vm8 = vcmp.ge.f32.partialorder %v2910_v61, 0.0  ;;  %v2438_v39 = vadd.f32 %v5612_v22, %v2232_v6  ;;  %v5959_v3 = vld [vmem:[#allocation14_spill] sm:$0xff] }
 0x216   : > { %v3590_v57 = vpack.c.bf16 %v3001_v32, %v3000_v24  ;;  %v2911_v2 = vadd.f32 %v5642_v29, %v2872_v7  ;;  %v4102_v16 = vpop.f32.mrf.mxu0  ;;  %v2870_v60 = vadd.f32 %v2793_v4, %v2658_v19  ;;  %v2663_v26 = vadd.f32 %v4067_v44, %v5954_v52 }
 0x217   : > { %v2594_v8 = vpop.f32.mrf.mxu1  ;;  %vm2940_vm10 = vcmp.ge.f32.partialorder %v2908_v45, 0.0  ;;  %v2972_v31 = vmul.f32 0.25, %v2908_v45  ;;  %v3006_v58 = vsel %vm2942_vm8, %v2910_v61, %v2974_v18  ;;  %v2440_v4 = vadd.f32 %v5957_v36, %v2234_v5 }
 0x218   : > { %3642 = vst [vmem:[%s5668_s6 + $0x30] sm:$0xff] %v3590_v57   ;;  %vm2943_vm9 = vcmp.ge.f32.partialorder %v2911_v2, 0.0  ;;  %v2975_v49 = vmul.f32 0.25, %v2911_v2  ;;  %v2661_v62 = vadd.f32 %v2594_v8, %v5956_v51  ;;  %v2809_v46 = vpop.f32.mrf.mxu0  ;;  %v2909_v25 = vadd.f32 %v5642_v29, %v2870_v60 }
 0x219   : > { %v2875_v48 = vadd.f32 %v4101_v43, %v2663_v26  ;;  %v4068_v35 = vpop.f32.mrf.mxu1  ;;  %v3004_v10 = vsel %vm2940_vm10, %v2908_v45, %v2972_v31  ;;  %v2238_v12 = vadd.f32 %v5628_v1, %v5959_v3  ;;  %v5963_v31 = vld [vmem:[#allocation17_spill] sm:$0xff] }
 0x21a   : > { %v3007_v54 = vsel %vm2943_vm9, %v2911_v2, %v2975_v49  ;;  %v2873_v37 = vadd.f32 %v2806_v40, %v2661_v62  ;;  %v2664_v55 = vadd.f32 %v4068_v35, %v2436_v27  ;;  %v4105_v21 = vpop.f32.mrf.mxu0  ;;  %vm2941_vm11 = vcmp.ge.f32.partialorder %v2909_v25, 0.0  ;;  %v5964_v35 = vld [vmem:[#allocation20_spill] sm:$0xff] }
 0x21b   : > { %v3605_v23 = vpack.c.bf16 %v3007_v54, %v3006_v58  ;;  %v2973_v15 = vmul.f32 0.25, %v2909_v25  ;;  %v2914_v34 = vadd.f32 %v5642_v29, %v2875_v48  ;;  %v2597_v11 = vpop.f32.mrf.mxu1 }
 0x21c   : > { %v2876_v33 = vadd.f32 %v4102_v16, %v2664_v55  ;;  %v2662_v28 = vadd.f32 %v2597_v11, %v2434_v47  ;;  %v2822_v9 = vpop.f32.mrf.mxu0  ;;  %v2912_v56 = vadd.f32 %v5642_v29, %v2873_v37  ;;  %v5961_v16 = vld [vmem:[#allocation16_spill] sm:$0xff]  ;;  %v5965_v37 = vld [vmem:[#allocation25_spill] sm:$0xff] }
 0x21d   : > { %3645 = vst [vmem:[%s5668_s6 + $0x48] sm:$0xff] %v3605_v23   ;;  %v3005_v14 = vsel %vm2941_vm11, %v2909_v25, %v2973_v15  ;;  %v4071_v20 = vpop.f32.mrf.mxu1  ;;  %v2978_v38 = vmul.f32 0.25, %v2914_v34  ;;  %vm2946_vm12 = vcmp.ge.f32.partialorder %v2914_v34, 0.0  ;;  %v2236_v5 = vadd.f32 %v5962_v53, %v5961_v16  ;;  %v5966_v23 = vld [vmem:[#allocation28_spill] sm:$0xff] }
 0x21e   : > { %v3600_v30 = vpack.c.bf16 %v3005_v14, %v3004_v10  ;;  %v2915_v59 = vadd.f32 %v5642_v29, %v2876_v33  ;;  %v4106_v0 = vpop.f32.mrf.mxu0  ;;  %v2874_v17 = vadd.f32 %v2809_v46, %v2662_v28  ;;  %v2667_v42 = vadd.f32 %v4071_v20, %v5958_v41 }
 0x21f   : > { %v2610_v43 = vpop.f32.mrf.mxu1  ;;  %vm2944_vm14 = vcmp.ge.f32.partialorder %v2912_v56, 0.0  ;;  %v2976_v40 = vmul.f32 0.25, %v2912_v56  ;;  %v3010_v32 = vsel %vm2946_vm12, %v2914_v34, %v2978_v38  ;;  %v2444_v25 = vadd.f32 %v5963_v31, %v2238_v12 }
 0x220   : > { %3644 = vst [vmem:[%s5668_s6 + $0x40] sm:$0xff] %v3600_v30   ;;  %vm2947_vm13 = vcmp.ge.f32.partialorder %v2915_v59, 0.0  ;;  %v2979_v61 = vmul.f32 0.25, %v2915_v59  ;;  %v2665_v7 = vadd.f32 %v2610_v43, %v5960_v50  ;;  %v2825_v19 = vpop.f32.mrf.mxu0  ;;  %v2913_v27 = vadd.f32 %v5642_v29, %v2874_v17 }
 0x221   : > { %v2879_v24 = vadd.f32 %v4105_v21, %v2667_v42  ;;  %v4072_v22 = vpop.f32.mrf.mxu1  ;;  %v3008_v26 = vsel %vm2944_vm14, %v2912_v56, %v2976_v40  ;;  %v2442_v55 = vadd.f32 %v5965_v37, %v2236_v5 }
 0x222   : > { %v3011_v45 = vsel %vm2947_vm13, %v2915_v59, %v2979_v61  ;;  %v2877_v44 = vadd.f32 %v2822_v9, %v2665_v7  ;;  %v2668_v13 = vadd.f32 %v4072_v22, %v2440_v4  ;;  %v4109_v47 = vpop.f32.mrf.mxu0  ;;  %vm2945_vm15 = vcmp.ge.f32.partialorder %v2913_v27, 0.0 }
 0x223   : > { %v3615_v57 = vpack.c.bf16 %v3011_v45, %v3010_v32  ;;  %v2977_v1 = vmul.f32 0.25, %v2913_v27  ;;  %v2918_v18 = vadd.f32 %v5642_v29, %v2879_v24  ;;  %v2613_v2 = vpop.f32.mrf.mxu1 }
 0x224   : > { %v2880_v60 = vadd.f32 %v4106_v0, %v2668_v13  ;;  %v2666_v52 = vadd.f32 %v2613_v2, %v2438_v39  ;;  %v2916_v63 = vadd.f32 %v5642_v29, %v2877_v44  ;;  %v2838_v46 = vpop.f32.mrf.mxu0 }
 0x225   : > { %3647 = vst [vmem:[%s5668_s6 + $0x58] sm:$0xff] %v3615_v57   ;;  %v3009_v8 = vsel %vm2945_vm15, %v2913_v27, %v2977_v1  ;;  %v4075_v6 = vpop.f32.mrf.mxu1  ;;  %v2982_v51 = vmul.f32 0.25, %v2918_v18  ;;  %vm2950_vm0 = vcmp.ge.f32.partialorder %v2918_v18, 0.0 }
 0x226   : > { %v3610_v49 = vpack.c.bf16 %v3009_v8, %v3008_v26  ;;  %v2919_v62 = vadd.f32 %v5642_v29, %v2880_v60  ;;  %v2878_v48 = vadd.f32 %v2825_v19, %v2666_v52  ;;  %v2671_v58 = vadd.f32 %v4075_v6, %v5964_v35  ;;  %v4110_v20 = vpop.f32.mrf.mxu0 }
 0x227   : > { %v2626_v54 = vpop.f32.mrf.mxu1  ;;  %vm2948_vm2 = vcmp.ge.f32.partialorder %v2916_v63, 0.0  ;;  %v2980_v34 = vmul.f32 0.25, %v2916_v63  ;;  %v3014_v9 = vsel %vm2950_vm0, %v2918_v18, %v2982_v51 }
 0x228   : > { %3646 = vst [vmem:[%s5668_s6 + $0x50] sm:$0xff] %v3610_v49   ;;  %vm2951_vm1 = vcmp.ge.f32.partialorder %v2919_v62, 0.0  ;;  %v2983_v21 = vmul.f32 0.25, %v2919_v62  ;;  %v2669_v15 = vadd.f32 %v2626_v54, %v5966_v23  ;;  %v2917_v11 = vadd.f32 %v5642_v29, %v2878_v48  ;;  %v2841_v12 = vpop.f32.mrf.mxu0 }
 0x229   : > { %v2883_v33 = vadd.f32 %v4109_v47, %v2671_v58  ;;  %v4076_v28 = vpop.f32.mrf.mxu1  ;;  %v3012_v39 = vsel %vm2948_vm2, %v2916_v63, %v2980_v34 }
 0x22a   : > { %v3015_v10 = vsel %vm2951_vm1, %v2919_v62, %v2983_v21  ;;  %v2881_v14 = vadd.f32 %v2838_v46, %v2669_v15  ;;  %v2672_v56 = vadd.f32 %v4076_v28, %v2444_v25  ;;  %vm2949_vm3 = vcmp.ge.f32.partialorder %v2917_v11, 0.0 }
 0x22b   : > { %v3625_v36 = vpack.c.bf16 %v3015_v10, %v3014_v9  ;;  %v2981_v4 = vmul.f32 0.25, %v2917_v11  ;;  %v2922_v30 = vadd.f32 %v5642_v29, %v2883_v33  ;;  %v2629_v38 = vpop.f32.mrf.mxu1 }
 0x22c   : > { %v2884_v59 = vadd.f32 %v4110_v20, %v2672_v56  ;;  %v2670_v0 = vadd.f32 %v2629_v38, %v2442_v55  ;;  %v2920_v41 = vadd.f32 %v5642_v29, %v2881_v14 }
 0x22d   : > { %3649 = vst [vmem:[%s5668_s6 + $0x68] sm:$0xff] %v3625_v36   ;;  %v3013_v17 = vsel %vm2949_vm3, %v2917_v11, %v2981_v4  ;;  %v2986_v43 = vmul.f32 0.25, %v2922_v30  ;;  %vm2954_vm4 = vcmp.ge.f32.partialorder %v2922_v30, 0.0 }
 0x22e   : > { %v3620_v42 = vpack.c.bf16 %v3013_v17, %v3012_v39  ;;  %v2923_v3 = vadd.f32 %v5642_v29, %v2884_v59  ;;  %v2882_v61 = vadd.f32 %v2841_v12, %v2670_v0  ;;  %v2984_v7 = vmul.f32 0.25, %v2920_v41 }
 0x22f   : > { %v3018_v40 = vsel %vm2954_vm4, %v2922_v30, %v2986_v43  ;;  %vm2952_vm6 = vcmp.ge.f32.partialorder %v2920_v41, 0.0 }
 0x230   : > { %3648 = vst [vmem:[%s5668_s6 + $0x60] sm:$0xff] %v3620_v42   ;;  %vm2955_vm5 = vcmp.ge.f32.partialorder %v2923_v3, 0.0  ;;  %v2987_v50 = vmul.f32 0.25, %v2923_v3  ;;  %v2921_v19 = vadd.f32 %v5642_v29, %v2882_v61  ;;  %v3016_v32 = vsel %vm2952_vm6, %v2920_v41, %v2984_v7 }
 0x232   : > { %v3019_v27 = vsel %vm2955_vm5, %v2923_v3, %v2987_v50  ;;  %vm2953_vm7 = vcmp.ge.f32.partialorder %v2921_v19, 0.0  ;;  %v2985_v22 = vmul.f32 0.25, %v2921_v19 }
 0x233   : > { %v3635_v24 = vpack.c.bf16 %v3019_v27, %v3018_v40 }
 0x234   : > { %v3017_v45 = vsel %vm2953_vm7, %v2921_v19, %v2985_v22 }
 0x235   : > { %3651 = vst [vmem:[%s5668_s6 + $0x78] sm:$0xff] %v3635_v24   ;;  %v3630_v29 = vpack.c.bf16 %v3017_v45, %v3016_v32 }
 0x237   : > { %3650 = vst [vmem:[%s5668_s6 + $0x70] sm:$0xff] %v3630_v29  }
 0x238   : > { %4196 = shalt.err (!%p4193_p3)
}
 0x239   : > { %s4197_s25 = scalar_lea.hbm %s5766_s11, 2048  ;;  %s4201_s28 = scalar_lea.hbm %s5816_s3, 4096 }
 0x23a   : > { %p4198_p4 = scmp.ne.s32.totalorder %s5766_s11, %s4197_s25  ;;  %p4202_p9 = scmp.lt.s32.totalorder %s5766_s11, %s5816_s3 }
 0x23b   : > { %p4203_p10 = scmp.lt.s32.totalorder %s4201_s28, %s4197_s25 }
 0x23c   : > { %p4199_p7 = pnand %p4198_p4, %p4306_p5 }
 0x23d   : > { %p4204_p11 = por %p4203_p10, %p4202_p9 }
 0x23e   : > { %p4200_p8 = pneg %p4199_p7 }
 0x240   : > { %p4205_p12 = pnand %p4204_p11, %p4200_p8 }
 0x242   : > { %4208 = shalt.err (!%p4205_p12)
}
 0x243   : > { %s4246_s4 = smov 64   ;;  %s4247_s5 = smov 4  }
 0x244   : > { %4124 = dma.vmem_to_hbm [thread:$0]  (%p4306_p5), %s5768_s8, 2048, %s5766_s11, %s5773_s16, %s4246_s4, %s4246_s4, %s4247_s5  }
 0x245 PF: > { %p4130_p13 = scmp.ge.s32.totalorder %s4243_s15, 2  ;;  %s3209_s6 = sand.u32 1, %s4231_s12  }
 0x246   : > { %s3210_s7 = scalar_lea.sflag [#allocation3], %s3209_s6 }
 0x247   : > { %p4127_p0 = pnand %p4130_p13, %p4310_p6 }
 0x249   : > { %p4128_p1 = pneg %p4127_p0 }
 0x24b   : > { %4226 = dma.done.wait (%p4128_p1), %s3210_s7, 2048  }
 0x24c   : > { %4228 = vsyncadd (%p4128_p1), %s3210_s7, 4294965248  ;;  %p13_p2 = scmp.ge.s32.totalorder %s4293_s18, 4   ;;  %s5967_s12 = smov %s4235_s13 }
 0x24d   : > { %s5968_s13 = smov %s4239_s14  ;;  %s5969_s14 = smov %s4304_s21 }
 0x24e   : > { %s5970_s15 = smov %s4293_s18  ;;  %15 = sbr.rel (!%p13_p2) target bundleno = 3 (0x3), region = 75 }
 0x253   :  { %3215 = vsyncpa [#allocation3], 1 }
 0x254   :  { %3217 = vsyncpa [#allocation3 + $0x1], 1 }

</bundles_post_ra>
